<compile_context>
chip_gen: v7x
topology: tpu7x:2x2x1
jax: 0.10.0
libtpu: 0.0.40
codegen_flags: <defaults>
</compile_context>

<pallas_src>
import jax
import jax.numpy as jnp
from jax.experimental import pallas as pl
from jax.experimental.pallas import tpu as pltpu

# ----------------------------- model dimensions ------------------------------
B = 8                     # batch
OBS_DIM = 32              # observation_length
ACT_DIM = 8               # action_length
Z_DIM = 16                # z_dimension
PRE_HID = 128             # preprocessor_hidden_dimension
FEAT = 64                 # preprocessor_feature_space_dimension
HIDDEN = 64               # hidden_dimension (OFE FC_block width)
PHI_O_HIDDEN_LAYERS = 3
PHI_AO_HIDDEN_LAYERS = 2
LN_EPS = 1e-5             # nn.LayerNorm default
LEAKY_SLOPE = 0.01        # nn.LeakyReLU default

assert FEAT == HIDDEN, "packing scheme assumes feature dim == hidden dim"
assert Z_DIM <= HIDDEN

# rows consumed from the original (PyTorch-layout) weight per stream kind
ROWS = {"feat": FEAT, "hid": HIDDEN, "act": ACT_DIM}


def ofe_stream_plan():
    """Stream kinds feeding each FC_block of one OFEModel.

    Mirrors OFEModel.forward exactly, with torch.cat replaced by an ordered list of
    streams (order == cat order), so weight-row splits line up with the original weights.
    """
    plan = []
    # phi_o loop
    o_begin = ["feat"]
    streams = ["feat"]
    for _ in range(PHI_O_HIDDEN_LAYERS):
        plan.append(list(streams))
        streams = o_begin + ["hid"]
        o_begin = ["hid"]
    # phi_ao loop (list length = phi_ao_hidden_layers + 2)
    oa_begin = ["act", "hid"]
    streams = list(oa_begin)
    for _ in range(PHI_AO_HIDDEN_LAYERS + 2):
        plan.append(list(streams))
        streams = oa_begin + ["hid"]
        oa_begin = ["hid"]
    return plan


OFE_PLAN = ofe_stream_plan()
OFE_W_ROWS = sum(ROWS[k] for layer in OFE_PLAN for k in layer)   # weight rows per OFE in slab64
OFE_V_ROWS = 3 * len(OFE_PLAN)                                   # b/gamma/beta rows per OFE

# --- static row offsets inside the two parameter slabs ---
W1_OBS = 0                                   # pre_slab: Linear-1 rows for observation
W1_Z = OBS_DIM                               # pre_slab: Linear-1 rows for z
B1_ROW = OBS_DIM + Z_DIM                     # pre_slab: bias / gamma / beta rows
G1_ROW = B1_ROW + 1
BE1_ROW = B1_ROW + 2
PRE_SLAB_ROWS = B1_ROW + 3

VEC_BASE = PRE_HID + 2 * OFE_W_ROWS          # slab64: start of the bias/gamma/beta region
SLAB64_ROWS = VEC_BASE + 1 + 2 * OFE_V_ROWS


# ------------------------------- Pallas kernel --------------------------------
def ore_kernel(obs_ref, z_ref, act_ref, pre_ref, slab_ref, out1_ref, out2_ref):
    def leaky_relu(x):
        return jnp.where(x >= 0.0, x, LEAKY_SLOPE * x)

    def layernorm(x, gamma, beta, valid):
        width = x.shape[-1]
        if valid == width:
            m = jnp.mean(x, axis=-1, keepdims=True)
            xm = x - m
            v = jnp.mean(xm * xm, axis=-1, keepdims=True)
        else:
            # padded columns of x are exact zeros -> full-width sum == valid-prefix sum
            m = jnp.sum(x, axis=-1, keepdims=True) * (1.0 / valid)
            xm = x - m
            mask = jax.lax.broadcasted_iota(jnp.int32, x.shape, 1) < valid
            xmm = jnp.where(mask, xm, 0.0)
            v = jnp.sum(xmm * xmm, axis=-1, keepdims=True) * (1.0 / valid)
        return xm * jax.lax.rsqrt(v + LN_EPS) * gamma + beta

    obs = obs_ref[...]                                       # (B, OBS_DIM)
    zv = z_ref[...]                                          # (B, Z_DIM)
    act = act_ref[...]                                       # (B, ACT_DIM)

    # ---- obs_z preprocessor: Linear -> LayerNorm -> Tanh -> Linear -> ReLU ----
    # cat(obs, z) @ W1  ==  obs @ W1[:OBS] + z @ W1[OBS:OBS+Z]
    h = (jnp.dot(obs, pre_ref[W1_OBS:W1_OBS + OBS_DIM, :], preferred_element_type=jnp.float32)
         + jnp.dot(zv, pre_ref[W1_Z:W1_Z + Z_DIM, :], preferred_element_type=jnp.float32)
         + pre_ref[B1_ROW:B1_ROW + 1, :])
    h = jnp.tanh(layernorm(h, pre_ref[G1_ROW:G1_ROW + 1, :], pre_ref[BE1_ROW:BE1_ROW + 1, :], PRE_HID))
    feat = (jnp.dot(h, slab_ref[0:PRE_HID, :], preferred_element_type=jnp.float32)
            + slab_ref[VEC_BASE:VEC_BASE + 1, :])
    feat = jnp.maximum(feat, 0.0)                            # (B, FEAT)

    # ---- one OFE tower; every concat replaced by a sum of per-stream matmuls ----
    def run_ofe(w_base, v_base):
        cursor = {"w": w_base, "v": v_base}

        def fc_block(streams, valid):
            y = None
            for kind, arr in streams:
                rows = ROWS[kind]
                w = slab_ref[cursor["w"]:cursor["w"] + rows, :]   # static, sublane-aligned view
                cursor["w"] += rows
                t = jnp.dot(arr, w, preferred_element_type=jnp.float32)
                y = t if y is None else y + t
            r = cursor["v"]
            cursor["v"] += 3
            b = slab_ref[r:r + 1, :]
            g = slab_ref[r + 1:r + 2, :]
            be = slab_ref[r + 2:r + 3, :]
            return layernorm(leaky_relu(y + b), g, be, valid)

        # phi_o loop (mirrors OFEModel.forward)
        streams = [("feat", feat)]
        o_begin = [("feat", feat)]
        out = feat
        for _ in range(PHI_O_HIDDEN_LAYERS):
            out = fc_block(streams, HIDDEN)
            streams = o_begin + [("hid", out)]
            o_begin = [("hid", out)]

        # phi_ao loop; the "action" stream is a direct (B, ACT_DIM) x (ACT_DIM, HIDDEN) matmul
        oa_begin = [("act", act), ("hid", out)]
        streams = list(oa_begin)
        n_ao = PHI_AO_HIDDEN_LAYERS + 2
        for j in range(n_ao):
            valid = Z_DIM if j == n_ao - 1 else HIDDEN
            out = fc_block(streams, valid)
            streams = oa_begin + [("hid", out)]
            oa_begin = [("hid", out)]
        return out                                           # (B, HIDDEN); cols >= Z_DIM are zero

    out1_ref[...] = run_ofe(PRE_HID, VEC_BASE + 1)[:, :Z_DIM]
    out2_ref[...] = run_ofe(PRE_HID + OFE_W_ROWS, VEC_BASE + 1 + OFE_V_ROWS)[:, :Z_DIM]


# --------------------------- wrapper-side packing -------------------------------
def pack_params(params):
    """One-time repack: split concatenated-input weights per stream and pack everything
    into 2 dense slabs (few DMA descriptors, static in-kernel row offsets)."""
    pre = params["pre"]
    # pre_slab (width PRE_HID): [W1 rows (obs then z) | b1 | gamma1 | beta1]
    pre_slab = jnp.concatenate(
        [pre["w1"], pre["b1"][None, :], pre["g1"][None, :], pre["be1"][None, :]], axis=0)
    assert pre_slab.shape == (PRE_SLAB_ROWS, PRE_HID)

    # slab64 (width HIDDEN): [W2 | OFE1 weight blocks | OFE2 weight blocks | vec rows]
    blocks = [pre["w2"]]                                     # (PRE_HID, FEAT)
    vec_rows = [pre["b2"]]
    for key in ("ofe1", "ofe2"):
        p = params[key]
        layers = p["phi_o"] + p["phi_ao"]
        for layer, kinds in zip(layers, OFE_PLAN):
            w = layer["w"]
            r = 0
            for kind in kinds:
                rows = ROWS[kind]
                piece = w[r:r + rows, :]
                r += rows
                if piece.shape[1] < HIDDEN:                  # final layer (out = Z_DIM)
                    piece = jnp.pad(piece, ((0, 0), (0, HIDDEN - piece.shape[1])))
                blocks.append(piece)
            assert r == w.shape[0]
            for name in ("b", "g", "be"):
                v = layer[name]
                if v.shape[0] < HIDDEN:
                    v = jnp.pad(v, (0, HIDDEN - v.shape[0]))
                vec_rows.append(v)

    slab64 = jnp.concatenate(blocks + [jnp.stack(vec_rows)], axis=0)
    assert slab64.shape == (SLAB64_ROWS, HIDDEN)
    return {"pre_slab": pre_slab, "slab64": slab64}


def ore_forward(packed, observation, action, z):
    b = observation.shape[0]
    vmem = pl.BlockSpec(memory_space=pltpu.MemorySpace.VMEM)
    return pl.pallas_call(
        ore_kernel,
        out_shape=(jax.ShapeDtypeStruct((b, Z_DIM), jnp.float32),
                   jax.ShapeDtypeStruct((b, Z_DIM), jnp.float32)),
        in_specs=[vmem] * 5,
        out_specs=(vmem, vmem),
    )(observation, z, action, packed["pre_slab"], packed["slab64"])


# --------------------------- pure-JAX reference ---------------------------------
def ore_reference(params, observation, action, z):
    def layernorm(x, g, be):
        m = x.mean(-1, keepdims=True)
        v = ((x - m) ** 2).mean(-1, keepdims=True)
        return (x - m) / jnp.sqrt(v + LN_EPS) * g + be

    def fc_block(x, layer):
        y = x @ layer["w"] + layer["b"]
        a = jnp.where(y >= 0.0, y, LEAKY_SLOPE * y)
        return layernorm(a, layer["g"], layer["be"])

    def ofe(p, obs_z, act):
        o_begin = obs_z
        combined = o_begin
        output = obs_z
        for layer in p["phi_o"]:
            output = fc_block(combined, layer)
            combined = jnp.concatenate([o_begin, output], axis=-1)
            o_begin = output
        oa_begin = jnp.concatenate([act, output], axis=-1)
        combined = oa_begin
        for layer in p["phi_ao"]:
            output = fc_block(combined, layer)
            combined = jnp.concatenate([oa_begin, output], axis=-1)
            oa_begin = output
        return output

    pre = params["pre"]
    xz = jnp.concatenate([observation, z], axis=-1)
    h = jnp.tanh(layernorm(xz @ pre["w1"] + pre["b1"], pre["g1"], pre["be1"]))
    feat = jax.nn.relu(h @ pre["w2"] + pre["b2"])
    return ofe(params["ofe1"], feat, action), ofe(params["ofe2"], feat, action)


# ---------------------------- deterministic params ------------------------------
def linear_init(key, fan_in, fan_out):
    kw, kb = jax.random.split(key)
    bound = 1.0 / (fan_in ** 0.5)
    w = jax.random.uniform(kw, (fan_in, fan_out), jnp.float32, -bound, bound)
    b = jax.random.uniform(kb, (fan_out,), jnp.float32, -bound, bound)
    return w, b


def fc_block_init(key, in_dim, out_dim):
    kl, kg, kb = jax.random.split(key, 3)
    w, b = linear_init(kl, in_dim, out_dim)
    g = 1.0 + 0.1 * jax.random.normal(kg, (out_dim,), jnp.float32)
    be = 0.1 * jax.random.normal(kb, (out_dim,), jnp.float32)
    return {"w": w, "b": b, "g": g, "be": be}


def ofe_layer_dims():
    phi_o = [(FEAT, HIDDEN), (FEAT + HIDDEN, HIDDEN)]
    phi_o += [(2 * HIDDEN, HIDDEN)] * (PHI_O_HIDDEN_LAYERS - 2)
    phi_ao = [(ACT_DIM + HIDDEN, HIDDEN), (ACT_DIM + 2 * HIDDEN, HIDDEN)]
    phi_ao += [(2 * HIDDEN, HIDDEN)] * (PHI_AO_HIDDEN_LAYERS - 1)
    phi_ao += [(2 * HIDDEN, Z_DIM)]
    return phi_o, phi_ao


def init_ofe(key):
    phi_o_dims, phi_ao_dims = ofe_layer_dims()
    dims = phi_o_dims + phi_ao_dims
    keys = jax.random.split(key, len(dims))
    layers = [fc_block_init(k, i, o) for k, (i, o) in zip(keys, dims)]
    return {"phi_o": layers[:len(phi_o_dims)], "phi_ao": layers[len(phi_o_dims):]}


def init_params(key):
    k1, k2, k3, k4, k5, k6 = jax.random.split(key, 6)
    w1, b1 = linear_init(k1, OBS_DIM + Z_DIM, PRE_HID)
    w2, b2 = linear_init(k2, PRE_HID, FEAT)
    g1 = 1.0 + 0.1 * jax.random.normal(k3, (PRE_HID,), jnp.float32)
    be1 = 0.1 * jax.random.normal(k4, (PRE_HID,), jnp.float32)
    return {
        "pre": {"w1": w1, "b1": b1, "g1": g1, "be1": be1, "w2": w2, "b2": b2},
        "ofe1": init_ofe(k5),
        "ofe2": init_ofe(k6),
    }


if __name__ == "__main__":
    key = jax.random.PRNGKey(0)
    k_param, k_obs, k_act, k_z = jax.random.split(key, 4)

    params = init_params(k_param)
    observation = jax.random.normal(k_obs, (B, OBS_DIM), jnp.float32)
    action = jax.random.uniform(k_act, (B, ACT_DIM), jnp.float32, -1.0, 1.0)
    z = jax.random.normal(k_z, (B, Z_DIM), jnp.float32)

    packed = pack_params(params)
    out1, out2 = jax.jit(ore_forward)(packed, observation, action, z)
    jax.block_until_ready((out1, out2))

    ref1, ref2 = ore_reference(params, observation, action, z)
    assert out1.shape == (B, Z_DIM) and out2.shape == (B, Z_DIM)
    assert jnp.allclose(out1, ref1, atol=1e-4, rtol=1e-4), "OFE1 output mismatch vs reference"
    assert jnp.allclose(out2, ref2, atol=1e-4, rtol=1e-4), "OFE2 output mismatch vs reference"

    print("KERNEL_OK")
</pallas_src>

<mosaic_0001>
module attributes {stable_mosaic.version = 11 : i64} {
  func.func @ore_kernel(%arg0: memref<8x32xf32, #tpu.memory_space<vmem>>, %arg1: memref<8x16xf32, #tpu.memory_space<vmem>>, %arg2: memref<8x8xf32, #tpu.memory_space<vmem>>, %arg3: memref<51x128xf32, #tpu.memory_space<vmem>>, %arg4: memref<1739x64xf32, #tpu.memory_space<vmem>>, %arg5: memref<8x16xf32, #tpu.memory_space<vmem>>, %arg6: memref<8x16xf32, #tpu.memory_space<vmem>>) attributes {dimension_semantics = [], scalar_prefetch = 0 : i64, scratch_operands = 0 : i64, tpu.core_type = #tpu.core_type<tc>} {
    %c0 = arith.constant 0 : index
    %c0_0 = arith.constant 0 : index
    %0 = vector.load %arg0[%c0, %c0_0] : memref<8x32xf32, #tpu.memory_space<vmem>>, vector<8x32xf32>
    %c0_1 = arith.constant 0 : index
    %c0_2 = arith.constant 0 : index
    %1 = vector.load %arg1[%c0_1, %c0_2] : memref<8x16xf32, #tpu.memory_space<vmem>>, vector<8x16xf32>
    %c0_3 = arith.constant 0 : index
    %c0_4 = arith.constant 0 : index
    %2 = vector.load %arg2[%c0_3, %c0_4] : memref<8x8xf32, #tpu.memory_space<vmem>>, vector<8x8xf32>
    %c0_5 = arith.constant 0 : index
    %c0_6 = arith.constant 0 : index
    %3 = vector.load %arg3[%c0_5, %c0_6] : memref<51x128xf32, #tpu.memory_space<vmem>>, vector<32x128xf32>
    %cst = arith.constant dense<0.000000e+00> : vector<8x128xf32>
    %4 = tpu.matmul %0, %3, %cst {dimension_numbers = #tpu.dot_dimension_numbers<[1], [0], [0], [1], [0, 0, 1, 1], [], []>} : vector<8x32xf32>, vector<32x128xf32>, vector<8x128xf32> -> vector<8x128xf32>
    %c32 = arith.constant 32 : index
    %c0_7 = arith.constant 0 : index
    %5 = vector.load %arg3[%c32, %c0_7] : memref<51x128xf32, #tpu.memory_space<vmem>>, vector<16x128xf32>
    %cst_8 = arith.constant dense<0.000000e+00> : vector<8x128xf32>
    %6 = tpu.matmul %1, %5, %cst_8 {dimension_numbers = #tpu.dot_dimension_numbers<[1], [0], [0], [1], [0, 0, 1, 1], [], []>} : vector<8x16xf32>, vector<16x128xf32>, vector<8x128xf32> -> vector<8x128xf32>
    %7 = arith.addf %4, %6 : vector<8x128xf32>
    %c48 = arith.constant 48 : index
    %c0_9 = arith.constant 0 : index
    %8 = vector.load %arg3[%c48, %c0_9] : memref<51x128xf32, #tpu.memory_space<vmem>>, vector<1x128xf32>
    %9 = vector.broadcast %8 : vector<1x128xf32> to vector<8x128xf32>
    %10 = arith.addf %7, %9 : vector<8x128xf32>
    %c49 = arith.constant 49 : index
    %c0_10 = arith.constant 0 : index
    %11 = vector.load %arg3[%c49, %c0_10] : memref<51x128xf32, #tpu.memory_space<vmem>>, vector<1x128xf32>
    %c50 = arith.constant 50 : index
    %c0_11 = arith.constant 0 : index
    %12 = vector.load %arg3[%c50, %c0_11] : memref<51x128xf32, #tpu.memory_space<vmem>>, vector<1x128xf32>
    %cst_12 = arith.constant dense<0.000000e+00> : vector<8xf32>
    %13 = vector.multi_reduction <add>, %10, %cst_12 [1] : vector<8x128xf32> to vector<8xf32>
    %14 = vector.shape_cast %13 : vector<8xf32> to vector<8x1xf32>
    %cst_13 = arith.constant 1.280000e+02 : f32
    %15 = vector.broadcast %cst_13 : f32 to vector<8x1xf32>
    %16 = arith.divf %14, %15 : vector<8x1xf32>
    %17 = vector.broadcast %16 : vector<8x1xf32> to vector<8x128xf32>
    %18 = arith.subf %10, %17 : vector<8x128xf32>
    %19 = arith.mulf %18, %18 : vector<8x128xf32>
    %cst_14 = arith.constant dense<0.000000e+00> : vector<8xf32>
    %20 = vector.multi_reduction <add>, %19, %cst_14 [1] : vector<8x128xf32> to vector<8xf32>
    %21 = vector.shape_cast %20 : vector<8xf32> to vector<8x1xf32>
    %cst_15 = arith.constant 1.280000e+02 : f32
    %22 = vector.broadcast %cst_15 : f32 to vector<8x1xf32>
    %23 = arith.divf %21, %22 : vector<8x1xf32>
    %cst_16 = arith.constant 9.99999974E-6 : f32
    %24 = vector.broadcast %cst_16 : f32 to vector<8x1xf32>
    %25 = arith.addf %23, %24 : vector<8x1xf32>
    %26 = math.rsqrt %25 : vector<8x1xf32>
    %27 = vector.broadcast %26 : vector<8x1xf32> to vector<8x128xf32>
    %28 = arith.mulf %18, %27 : vector<8x128xf32>
    %29 = vector.broadcast %11 : vector<1x128xf32> to vector<8x128xf32>
    %30 = arith.mulf %28, %29 : vector<8x128xf32>
    %31 = vector.broadcast %12 : vector<1x128xf32> to vector<8x128xf32>
    %32 = arith.addf %30, %31 : vector<8x128xf32>
    %33 = math.tanh %32 : vector<8x128xf32>
    %c0_17 = arith.constant 0 : index
    %c0_18 = arith.constant 0 : index
    %34 = vector.load %arg4[%c0_17, %c0_18] : memref<1739x64xf32, #tpu.memory_space<vmem>>, vector<128x64xf32>
    %cst_19 = arith.constant dense<0.000000e+00> : vector<8x64xf32>
    %35 = tpu.matmul %33, %34, %cst_19 {dimension_numbers = #tpu.dot_dimension_numbers<[1], [0], [0], [1], [0, 0, 1, 1], [], []>} : vector<8x128xf32>, vector<128x64xf32>, vector<8x64xf32> -> vector<8x64xf32>
    %c1696 = arith.constant 1696 : index
    %c0_20 = arith.constant 0 : index
    %36 = vector.load %arg4[%c1696, %c0_20] : memref<1739x64xf32, #tpu.memory_space<vmem>>, vector<1x64xf32>
    %37 = vector.broadcast %36 : vector<1x64xf32> to vector<8x64xf32>
    %38 = arith.addf %35, %37 : vector<8x64xf32>
    %cst_21 = arith.constant 0.000000e+00 : f32
    %39 = vector.broadcast %cst_21 : f32 to vector<8x64xf32>
    %40 = arith.maximumf %38, %39 : vector<8x64xf32>
    %c128 = arith.constant 128 : index
    %c0_22 = arith.constant 0 : index
    %41 = vector.load %arg4[%c128, %c0_22] : memref<1739x64xf32, #tpu.memory_space<vmem>>, vector<64x64xf32>
    %cst_23 = arith.constant dense<0.000000e+00> : vector<8x64xf32>
    %42 = tpu.matmul %40, %41, %cst_23 {dimension_numbers = #tpu.dot_dimension_numbers<[1], [0], [0], [1], [0, 0, 1, 1], [], []>} : vector<8x64xf32>, vector<64x64xf32>, vector<8x64xf32> -> vector<8x64xf32>
    %c1697 = arith.constant 1697 : index
    %c0_24 = arith.constant 0 : index
    %43 = vector.load %arg4[%c1697, %c0_24] : memref<1739x64xf32, #tpu.memory_space<vmem>>, vector<1x64xf32>
    %c1698 = arith.constant 1698 : index
    %c0_25 = arith.constant 0 : index
    %44 = vector.load %arg4[%c1698, %c0_25] : memref<1739x64xf32, #tpu.memory_space<vmem>>, vector<1x64xf32>
    %c1699 = arith.constant 1699 : index
    %c0_26 = arith.constant 0 : index
    %45 = vector.load %arg4[%c1699, %c0_26] : memref<1739x64xf32, #tpu.memory_space<vmem>>, vector<1x64xf32>
    %46 = vector.broadcast %43 : vector<1x64xf32> to vector<8x64xf32>
    %47 = arith.addf %42, %46 : vector<8x64xf32>
    %cst_27 = arith.constant 0.000000e+00 : f32
    %48 = vector.broadcast %cst_27 : f32 to vector<8x64xf32>
    %49 = arith.cmpf oge, %47, %48 : vector<8x64xf32>
    %cst_28 = arith.constant 0.00999999977 : f32
    %50 = vector.broadcast %cst_28 : f32 to vector<8x64xf32>
    %51 = arith.mulf %50, %47 : vector<8x64xf32>
    %52 = arith.select %49, %47, %51 : vector<8x64xi1>, vector<8x64xf32>
    %cst_29 = arith.constant dense<0.000000e+00> : vector<8xf32>
    %53 = vector.multi_reduction <add>, %52, %cst_29 [1] : vector<8x64xf32> to vector<8xf32>
    %54 = vector.shape_cast %53 : vector<8xf32> to vector<8x1xf32>
    %cst_30 = arith.constant 6.400000e+01 : f32
    %55 = vector.broadcast %cst_30 : f32 to vector<8x1xf32>
    %56 = arith.divf %54, %55 : vector<8x1xf32>
    %57 = vector.broadcast %56 : vector<8x1xf32> to vector<8x64xf32>
    %58 = arith.subf %52, %57 : vector<8x64xf32>
    %59 = arith.mulf %58, %58 : vector<8x64xf32>
    %cst_31 = arith.constant dense<0.000000e+00> : vector<8xf32>
    %60 = vector.multi_reduction <add>, %59, %cst_31 [1] : vector<8x64xf32> to vector<8xf32>
    %61 = vector.shape_cast %60 : vector<8xf32> to vector<8x1xf32>
    %cst_32 = arith.constant 6.400000e+01 : f32
    %62 = vector.broadcast %cst_32 : f32 to vector<8x1xf32>
    %63 = arith.divf %61, %62 : vector<8x1xf32>
    %cst_33 = arith.constant 9.99999974E-6 : f32
    %64 = vector.broadcast %cst_33 : f32 to vector<8x1xf32>
    %65 = arith.addf %63, %64 : vector<8x1xf32>
    %66 = math.rsqrt %65 : vector<8x1xf32>
    %67 = vector.broadcast %66 : vector<8x1xf32> to vector<8x64xf32>
    %68 = arith.mulf %58, %67 : vector<8x64xf32>
    %69 = vector.broadcast %44 : vector<1x64xf32> to vector<8x64xf32>
    %70 = arith.mulf %68, %69 : vector<8x64xf32>
    %71 = vector.broadcast %45 : vector<1x64xf32> to vector<8x64xf32>
    %72 = arith.addf %70, %71 : vector<8x64xf32>
    %c192 = arith.constant 192 : index
    %c0_34 = arith.constant 0 : index
    %73 = vector.load %arg4[%c192, %c0_34] : memref<1739x64xf32, #tpu.memory_space<vmem>>, vector<64x64xf32>
    %cst_35 = arith.constant dense<0.000000e+00> : vector<8x64xf32>
    %74 = tpu.matmul %40, %73, %cst_35 {dimension_numbers = #tpu.dot_dimension_numbers<[1], [0], [0], [1], [0, 0, 1, 1], [], []>} : vector<8x64xf32>, vector<64x64xf32>, vector<8x64xf32> -> vector<8x64xf32>
    %c256 = arith.constant 256 : index
    %c0_36 = arith.constant 0 : index
    %75 = vector.load %arg4[%c256, %c0_36] : memref<1739x64xf32, #tpu.memory_space<vmem>>, vector<64x64xf32>
    %cst_37 = arith.constant dense<0.000000e+00> : vector<8x64xf32>
    %76 = tpu.matmul %72, %75, %cst_37 {dimension_numbers = #tpu.dot_dimension_numbers<[1], [0], [0], [1], [0, 0, 1, 1], [], []>} : vector<8x64xf32>, vector<64x64xf32>, vector<8x64xf32> -> vector<8x64xf32>
    %77 = arith.addf %74, %76 : vector<8x64xf32>
    %c1700 = arith.constant 1700 : index
    %c0_38 = arith.constant 0 : index
    %78 = vector.load %arg4[%c1700, %c0_38] : memref<1739x64xf32, #tpu.memory_space<vmem>>, vector<1x64xf32>
    %c1701 = arith.constant 1701 : index
    %c0_39 = arith.constant 0 : index
    %79 = vector.load %arg4[%c1701, %c0_39] : memref<1739x64xf32, #tpu.memory_space<vmem>>, vector<1x64xf32>
    %c1702 = arith.constant 1702 : index
    %c0_40 = arith.constant 0 : index
    %80 = vector.load %arg4[%c1702, %c0_40] : memref<1739x64xf32, #tpu.memory_space<vmem>>, vector<1x64xf32>
    %81 = vector.broadcast %78 : vector<1x64xf32> to vector<8x64xf32>
    %82 = arith.addf %77, %81 : vector<8x64xf32>
    %cst_41 = arith.constant 0.000000e+00 : f32
    %83 = vector.broadcast %cst_41 : f32 to vector<8x64xf32>
    %84 = arith.cmpf oge, %82, %83 : vector<8x64xf32>
    %cst_42 = arith.constant 0.00999999977 : f32
    %85 = vector.broadcast %cst_42 : f32 to vector<8x64xf32>
    %86 = arith.mulf %85, %82 : vector<8x64xf32>
    %87 = arith.select %84, %82, %86 : vector<8x64xi1>, vector<8x64xf32>
    %cst_43 = arith.constant dense<0.000000e+00> : vector<8xf32>
    %88 = vector.multi_reduction <add>, %87, %cst_43 [1] : vector<8x64xf32> to vector<8xf32>
    %89 = vector.shape_cast %88 : vector<8xf32> to vector<8x1xf32>
    %cst_44 = arith.constant 6.400000e+01 : f32
    %90 = vector.broadcast %cst_44 : f32 to vector<8x1xf32>
    %91 = arith.divf %89, %90 : vector<8x1xf32>
    %92 = vector.broadcast %91 : vector<8x1xf32> to vector<8x64xf32>
    %93 = arith.subf %87, %92 : vector<8x64xf32>
    %94 = arith.mulf %93, %93 : vector<8x64xf32>
    %cst_45 = arith.constant dense<0.000000e+00> : vector<8xf32>
    %95 = vector.multi_reduction <add>, %94, %cst_45 [1] : vector<8x64xf32> to vector<8xf32>
    %96 = vector.shape_cast %95 : vector<8xf32> to vector<8x1xf32>
    %cst_46 = arith.constant 6.400000e+01 : f32
    %97 = vector.broadcast %cst_46 : f32 to vector<8x1xf32>
    %98 = arith.divf %96, %97 : vector<8x1xf32>
    %cst_47 = arith.constant 9.99999974E-6 : f32
    %99 = vector.broadcast %cst_47 : f32 to vector<8x1xf32>
    %100 = arith.addf %98, %99 : vector<8x1xf32>
    %101 = math.rsqrt %100 : vector<8x1xf32>
    %102 = vector.broadcast %101 : vector<8x1xf32> to vector<8x64xf32>
    %103 = arith.mulf %93, %102 : vector<8x64xf32>
    %104 = vector.broadcast %79 : vector<1x64xf32> to vector<8x64xf32>
    %105 = arith.mulf %103, %104 : vector<8x64xf32>
    %106 = vector.broadcast %80 : vector<1x64xf32> to vector<8x64xf32>
    %107 = arith.addf %105, %106 : vector<8x64xf32>
    %c320 = arith.constant 320 : index
    %c0_48 = arith.constant 0 : index
    %108 = vector.load %arg4[%c320, %c0_48] : memref<1739x64xf32, #tpu.memory_space<vmem>>, vector<64x64xf32>
    %cst_49 = arith.constant dense<0.000000e+00> : vector<8x64xf32>
    %109 = tpu.matmul %72, %108, %cst_49 {dimension_numbers = #tpu.dot_dimension_numbers<[1], [0], [0], [1], [0, 0, 1, 1], [], []>} : vector<8x64xf32>, vector<64x64xf32>, vector<8x64xf32> -> vector<8x64xf32>
    %c384 = arith.constant 384 : index
    %c0_50 = arith.constant 0 : index
    %110 = vector.load %arg4[%c384, %c0_50] : memref<1739x64xf32, #tpu.memory_space<vmem>>, vector<64x64xf32>
    %cst_51 = arith.constant dense<0.000000e+00> : vector<8x64xf32>
    %111 = tpu.matmul %107, %110, %cst_51 {dimension_numbers = #tpu.dot_dimension_numbers<[1], [0], [0], [1], [0, 0, 1, 1], [], []>} : vector<8x64xf32>, vector<64x64xf32>, vector<8x64xf32> -> vector<8x64xf32>
    %112 = arith.addf %109, %111 : vector<8x64xf32>
    %c1703 = arith.constant 1703 : index
    %c0_52 = arith.constant 0 : index
    %113 = vector.load %arg4[%c1703, %c0_52] : memref<1739x64xf32, #tpu.memory_space<vmem>>, vector<1x64xf32>
    %c1704 = arith.constant 1704 : index
    %c0_53 = arith.constant 0 : index
    %114 = vector.load %arg4[%c1704, %c0_53] : memref<1739x64xf32, #tpu.memory_space<vmem>>, vector<1x64xf32>
    %c1705 = arith.constant 1705 : index
    %c0_54 = arith.constant 0 : index
    %115 = vector.load %arg4[%c1705, %c0_54] : memref<1739x64xf32, #tpu.memory_space<vmem>>, vector<1x64xf32>
    %116 = vector.broadcast %113 : vector<1x64xf32> to vector<8x64xf32>
    %117 = arith.addf %112, %116 : vector<8x64xf32>
    %cst_55 = arith.constant 0.000000e+00 : f32
    %118 = vector.broadcast %cst_55 : f32 to vector<8x64xf32>
    %119 = arith.cmpf oge, %117, %118 : vector<8x64xf32>
    %cst_56 = arith.constant 0.00999999977 : f32
    %120 = vector.broadcast %cst_56 : f32 to vector<8x64xf32>
    %121 = arith.mulf %120, %117 : vector<8x64xf32>
    %122 = arith.select %119, %117, %121 : vector<8x64xi1>, vector<8x64xf32>
    %cst_57 = arith.constant dense<0.000000e+00> : vector<8xf32>
    %123 = vector.multi_reduction <add>, %122, %cst_57 [1] : vector<8x64xf32> to vector<8xf32>
    %124 = vector.shape_cast %123 : vector<8xf32> to vector<8x1xf32>
    %cst_58 = arith.constant 6.400000e+01 : f32
    %125 = vector.broadcast %cst_58 : f32 to vector<8x1xf32>
    %126 = arith.divf %124, %125 : vector<8x1xf32>
    %127 = vector.broadcast %126 : vector<8x1xf32> to vector<8x64xf32>
    %128 = arith.subf %122, %127 : vector<8x64xf32>
    %129 = arith.mulf %128, %128 : vector<8x64xf32>
    %cst_59 = arith.constant dense<0.000000e+00> : vector<8xf32>
    %130 = vector.multi_reduction <add>, %129, %cst_59 [1] : vector<8x64xf32> to vector<8xf32>
    %131 = vector.shape_cast %130 : vector<8xf32> to vector<8x1xf32>
    %cst_60 = arith.constant 6.400000e+01 : f32
    %132 = vector.broadcast %cst_60 : f32 to vector<8x1xf32>
    %133 = arith.divf %131, %132 : vector<8x1xf32>
    %cst_61 = arith.constant 9.99999974E-6 : f32
    %134 = vector.broadcast %cst_61 : f32 to vector<8x1xf32>
    %135 = arith.addf %133, %134 : vector<8x1xf32>
    %136 = math.rsqrt %135 : vector<8x1xf32>
    %137 = vector.broadcast %136 : vector<8x1xf32> to vector<8x64xf32>
    %138 = arith.mulf %128, %137 : vector<8x64xf32>
    %139 = vector.broadcast %114 : vector<1x64xf32> to vector<8x64xf32>
    %140 = arith.mulf %138, %139 : vector<8x64xf32>
    %141 = vector.broadcast %115 : vector<1x64xf32> to vector<8x64xf32>
    %142 = arith.addf %140, %141 : vector<8x64xf32>
    %c448 = arith.constant 448 : index
    %c0_62 = arith.constant 0 : index
    %143 = vector.load %arg4[%c448, %c0_62] : memref<1739x64xf32, #tpu.memory_space<vmem>>, vector<8x64xf32>
    %cst_63 = arith.constant dense<0.000000e+00> : vector<8x64xf32>
    %144 = tpu.matmul %2, %143, %cst_63 {dimension_numbers = #tpu.dot_dimension_numbers<[1], [0], [0], [1], [0, 0, 1, 1], [], []>} : vector<8x8xf32>, vector<8x64xf32>, vector<8x64xf32> -> vector<8x64xf32>
    %c456 = arith.constant 456 : index
    %c0_64 = arith.constant 0 : index
    %145 = vector.load %arg4[%c456, %c0_64] : memref<1739x64xf32, #tpu.memory_space<vmem>>, vector<64x64xf32>
    %cst_65 = arith.constant dense<0.000000e+00> : vector<8x64xf32>
    %146 = tpu.matmul %142, %145, %cst_65 {dimension_numbers = #tpu.dot_dimension_numbers<[1], [0], [0], [1], [0, 0, 1, 1], [], []>} : vector<8x64xf32>, vector<64x64xf32>, vector<8x64xf32> -> vector<8x64xf32>
    %147 = arith.addf %144, %146 : vector<8x64xf32>
    %c1706 = arith.constant 1706 : index
    %c0_66 = arith.constant 0 : index
    %148 = vector.load %arg4[%c1706, %c0_66] : memref<1739x64xf32, #tpu.memory_space<vmem>>, vector<1x64xf32>
    %c1707 = arith.constant 1707 : index
    %c0_67 = arith.constant 0 : index
    %149 = vector.load %arg4[%c1707, %c0_67] : memref<1739x64xf32, #tpu.memory_space<vmem>>, vector<1x64xf32>
    %c1708 = arith.constant 1708 : index
    %c0_68 = arith.constant 0 : index
    %150 = vector.load %arg4[%c1708, %c0_68] : memref<1739x64xf32, #tpu.memory_space<vmem>>, vector<1x64xf32>
    %151 = vector.broadcast %148 : vector<1x64xf32> to vector<8x64xf32>
    %152 = arith.addf %147, %151 : vector<8x64xf32>
    %cst_69 = arith.constant 0.000000e+00 : f32
    %153 = vector.broadcast %cst_69 : f32 to vector<8x64xf32>
    %154 = arith.cmpf oge, %152, %153 : vector<8x64xf32>
    %cst_70 = arith.constant 0.00999999977 : f32
    %155 = vector.broadcast %cst_70 : f32 to vector<8x64xf32>
    %156 = arith.mulf %155, %152 : vector<8x64xf32>
    %157 = arith.select %154, %152, %156 : vector<8x64xi1>, vector<8x64xf32>
    %cst_71 = arith.constant dense<0.000000e+00> : vector<8xf32>
    %158 = vector.multi_reduction <add>, %157, %cst_71 [1] : vector<8x64xf32> to vector<8xf32>
    %159 = vector.shape_cast %158 : vector<8xf32> to vector<8x1xf32>
    %cst_72 = arith.constant 6.400000e+01 : f32
    %160 = vector.broadcast %cst_72 : f32 to vector<8x1xf32>
    %161 = arith.divf %159, %160 : vector<8x1xf32>
    %162 = vector.broadcast %161 : vector<8x1xf32> to vector<8x64xf32>
    %163 = arith.subf %157, %162 : vector<8x64xf32>
    %164 = arith.mulf %163, %163 : vector<8x64xf32>
    %cst_73 = arith.constant dense<0.000000e+00> : vector<8xf32>
    %165 = vector.multi_reduction <add>, %164, %cst_73 [1] : vector<8x64xf32> to vector<8xf32>
    %166 = vector.shape_cast %165 : vector<8xf32> to vector<8x1xf32>
    %cst_74 = arith.constant 6.400000e+01 : f32
    %167 = vector.broadcast %cst_74 : f32 to vector<8x1xf32>
    %168 = arith.divf %166, %167 : vector<8x1xf32>
    %cst_75 = arith.constant 9.99999974E-6 : f32
    %169 = vector.broadcast %cst_75 : f32 to vector<8x1xf32>
    %170 = arith.addf %168, %169 : vector<8x1xf32>
    %171 = math.rsqrt %170 : vector<8x1xf32>
    %172 = vector.broadcast %171 : vector<8x1xf32> to vector<8x64xf32>
    %173 = arith.mulf %163, %172 : vector<8x64xf32>
    %174 = vector.broadcast %149 : vector<1x64xf32> to vector<8x64xf32>
    %175 = arith.mulf %173, %174 : vector<8x64xf32>
    %176 = vector.broadcast %150 : vector<1x64xf32> to vector<8x64xf32>
    %177 = arith.addf %175, %176 : vector<8x64xf32>
    %c520 = arith.constant 520 : index
    %c0_76 = arith.constant 0 : index
    %178 = vector.load %arg4[%c520, %c0_76] : memref<1739x64xf32, #tpu.memory_space<vmem>>, vector<8x64xf32>
    %cst_77 = arith.constant dense<0.000000e+00> : vector<8x64xf32>
    %179 = tpu.matmul %2, %178, %cst_77 {dimension_numbers = #tpu.dot_dimension_numbers<[1], [0], [0], [1], [0, 0, 1, 1], [], []>} : vector<8x8xf32>, vector<8x64xf32>, vector<8x64xf32> -> vector<8x64xf32>
    %c528 = arith.constant 528 : index
    %c0_78 = arith.constant 0 : index
    %180 = vector.load %arg4[%c528, %c0_78] : memref<1739x64xf32, #tpu.memory_space<vmem>>, vector<64x64xf32>
    %cst_79 = arith.constant dense<0.000000e+00> : vector<8x64xf32>
    %181 = tpu.matmul %142, %180, %cst_79 {dimension_numbers = #tpu.dot_dimension_numbers<[1], [0], [0], [1], [0, 0, 1, 1], [], []>} : vector<8x64xf32>, vector<64x64xf32>, vector<8x64xf32> -> vector<8x64xf32>
    %182 = arith.addf %179, %181 : vector<8x64xf32>
    %c592 = arith.constant 592 : index
    %c0_80 = arith.constant 0 : index
    %183 = vector.load %arg4[%c592, %c0_80] : memref<1739x64xf32, #tpu.memory_space<vmem>>, vector<64x64xf32>
    %cst_81 = arith.constant dense<0.000000e+00> : vector<8x64xf32>
    %184 = tpu.matmul %177, %183, %cst_81 {dimension_numbers = #tpu.dot_dimension_numbers<[1], [0], [0], [1], [0, 0, 1, 1], [], []>} : vector<8x64xf32>, vector<64x64xf32>, vector<8x64xf32> -> vector<8x64xf32>
    %185 = arith.addf %182, %184 : vector<8x64xf32>
    %c1709 = arith.constant 1709 : index
    %c0_82 = arith.constant 0 : index
    %186 = vector.load %arg4[%c1709, %c0_82] : memref<1739x64xf32, #tpu.memory_space<vmem>>, vector<1x64xf32>
    %c1710 = arith.constant 1710 : index
    %c0_83 = arith.constant 0 : index
    %187 = vector.load %arg4[%c1710, %c0_83] : memref<1739x64xf32, #tpu.memory_space<vmem>>, vector<1x64xf32>
    %c1711 = arith.constant 1711 : index
    %c0_84 = arith.constant 0 : index
    %188 = vector.load %arg4[%c1711, %c0_84] : memref<1739x64xf32, #tpu.memory_space<vmem>>, vector<1x64xf32>
    %189 = vector.broadcast %186 : vector<1x64xf32> to vector<8x64xf32>
    %190 = arith.addf %185, %189 : vector<8x64xf32>
    %cst_85 = arith.constant 0.000000e+00 : f32
    %191 = vector.broadcast %cst_85 : f32 to vector<8x64xf32>
    %192 = arith.cmpf oge, %190, %191 : vector<8x64xf32>
    %cst_86 = arith.constant 0.00999999977 : f32
    %193 = vector.broadcast %cst_86 : f32 to vector<8x64xf32>
    %194 = arith.mulf %193, %190 : vector<8x64xf32>
    %195 = arith.select %192, %190, %194 : vector<8x64xi1>, vector<8x64xf32>
    %cst_87 = arith.constant dense<0.000000e+00> : vector<8xf32>
    %196 = vector.multi_reduction <add>, %195, %cst_87 [1] : vector<8x64xf32> to vector<8xf32>
    %197 = vector.shape_cast %196 : vector<8xf32> to vector<8x1xf32>
    %cst_88 = arith.constant 6.400000e+01 : f32
    %198 = vector.broadcast %cst_88 : f32 to vector<8x1xf32>
    %199 = arith.divf %197, %198 : vector<8x1xf32>
    %200 = vector.broadcast %199 : vector<8x1xf32> to vector<8x64xf32>
    %201 = arith.subf %195, %200 : vector<8x64xf32>
    %202 = arith.mulf %201, %201 : vector<8x64xf32>
    %cst_89 = arith.constant dense<0.000000e+00> : vector<8xf32>
    %203 = vector.multi_reduction <add>, %202, %cst_89 [1] : vector<8x64xf32> to vector<8xf32>
    %204 = vector.shape_cast %203 : vector<8xf32> to vector<8x1xf32>
    %cst_90 = arith.constant 6.400000e+01 : f32
    %205 = vector.broadcast %cst_90 : f32 to vector<8x1xf32>
    %206 = arith.divf %204, %205 : vector<8x1xf32>
    %cst_91 = arith.constant 9.99999974E-6 : f32
    %207 = vector.broadcast %cst_91 : f32 to vector<8x1xf32>
    %208 = arith.addf %206, %207 : vector<8x1xf32>
    %209 = math.rsqrt %208 : vector<8x1xf32>
    %210 = vector.broadcast %209 : vector<8x1xf32> to vector<8x64xf32>
    %211 = arith.mulf %201, %210 : vector<8x64xf32>
    %212 = vector.broadcast %187 : vector<1x64xf32> to vector<8x64xf32>
    %213 = arith.mulf %211, %212 : vector<8x64xf32>
    %214 = vector.broadcast %188 : vector<1x64xf32> to vector<8x64xf32>
    %215 = arith.addf %213, %214 : vector<8x64xf32>
    %c656 = arith.constant 656 : index
    %c0_92 = arith.constant 0 : index
    %216 = vector.load %arg4[%c656, %c0_92] : memref<1739x64xf32, #tpu.memory_space<vmem>>, vector<64x64xf32>
    %cst_93 = arith.constant dense<0.000000e+00> : vector<8x64xf32>
    %217 = tpu.matmul %177, %216, %cst_93 {dimension_numbers = #tpu.dot_dimension_numbers<[1], [0], [0], [1], [0, 0, 1, 1], [], []>} : vector<8x64xf32>, vector<64x64xf32>, vector<8x64xf32> -> vector<8x64xf32>
    %c720 = arith.constant 720 : index
    %c0_94 = arith.constant 0 : index
    %218 = vector.load %arg4[%c720, %c0_94] : memref<1739x64xf32, #tpu.memory_space<vmem>>, vector<64x64xf32>
    %cst_95 = arith.constant dense<0.000000e+00> : vector<8x64xf32>
    %219 = tpu.matmul %215, %218, %cst_95 {dimension_numbers = #tpu.dot_dimension_numbers<[1], [0], [0], [1], [0, 0, 1, 1], [], []>} : vector<8x64xf32>, vector<64x64xf32>, vector<8x64xf32> -> vector<8x64xf32>
    %220 = arith.addf %217, %219 : vector<8x64xf32>
    %c1712 = arith.constant 1712 : index
    %c0_96 = arith.constant 0 : index
    %221 = vector.load %arg4[%c1712, %c0_96] : memref<1739x64xf32, #tpu.memory_space<vmem>>, vector<1x64xf32>
    %c1713 = arith.constant 1713 : index
    %c0_97 = arith.constant 0 : index
    %222 = vector.load %arg4[%c1713, %c0_97] : memref<1739x64xf32, #tpu.memory_space<vmem>>, vector<1x64xf32>
    %c1714 = arith.constant 1714 : index
    %c0_98 = arith.constant 0 : index
    %223 = vector.load %arg4[%c1714, %c0_98] : memref<1739x64xf32, #tpu.memory_space<vmem>>, vector<1x64xf32>
    %224 = vector.broadcast %221 : vector<1x64xf32> to vector<8x64xf32>
    %225 = arith.addf %220, %224 : vector<8x64xf32>
    %cst_99 = arith.constant 0.000000e+00 : f32
    %226 = vector.broadcast %cst_99 : f32 to vector<8x64xf32>
    %227 = arith.cmpf oge, %225, %226 : vector<8x64xf32>
    %cst_100 = arith.constant 0.00999999977 : f32
    %228 = vector.broadcast %cst_100 : f32 to vector<8x64xf32>
    %229 = arith.mulf %228, %225 : vector<8x64xf32>
    %230 = arith.select %227, %225, %229 : vector<8x64xi1>, vector<8x64xf32>
    %cst_101 = arith.constant dense<0.000000e+00> : vector<8xf32>
    %231 = vector.multi_reduction <add>, %230, %cst_101 [1] : vector<8x64xf32> to vector<8xf32>
    %232 = vector.shape_cast %231 : vector<8xf32> to vector<8x1xf32>
    %cst_102 = arith.constant 6.400000e+01 : f32
    %233 = vector.broadcast %cst_102 : f32 to vector<8x1xf32>
    %234 = arith.divf %232, %233 : vector<8x1xf32>
    %235 = vector.broadcast %234 : vector<8x1xf32> to vector<8x64xf32>
    %236 = arith.subf %230, %235 : vector<8x64xf32>
    %237 = arith.mulf %236, %236 : vector<8x64xf32>
    %cst_103 = arith.constant dense<0.000000e+00> : vector<8xf32>
    %238 = vector.multi_reduction <add>, %237, %cst_103 [1] : vector<8x64xf32> to vector<8xf32>
    %239 = vector.shape_cast %238 : vector<8xf32> to vector<8x1xf32>
    %cst_104 = arith.constant 6.400000e+01 : f32
    %240 = vector.broadcast %cst_104 : f32 to vector<8x1xf32>
    %241 = arith.divf %239, %240 : vector<8x1xf32>
    %cst_105 = arith.constant 9.99999974E-6 : f32
    %242 = vector.broadcast %cst_105 : f32 to vector<8x1xf32>
    %243 = arith.addf %241, %242 : vector<8x1xf32>
    %244 = math.rsqrt %243 : vector<8x1xf32>
    %245 = vector.broadcast %244 : vector<8x1xf32> to vector<8x64xf32>
    %246 = arith.mulf %236, %245 : vector<8x64xf32>
    %247 = vector.broadcast %222 : vector<1x64xf32> to vector<8x64xf32>
    %248 = arith.mulf %246, %247 : vector<8x64xf32>
    %249 = vector.broadcast %223 : vector<1x64xf32> to vector<8x64xf32>
    %250 = arith.addf %248, %249 : vector<8x64xf32>
    %c784 = arith.constant 784 : index
    %c0_106 = arith.constant 0 : index
    %251 = vector.load %arg4[%c784, %c0_106] : memref<1739x64xf32, #tpu.memory_space<vmem>>, vector<64x64xf32>
    %cst_107 = arith.constant dense<0.000000e+00> : vector<8x64xf32>
    %252 = tpu.matmul %215, %251, %cst_107 {dimension_numbers = #tpu.dot_dimension_numbers<[1], [0], [0], [1], [0, 0, 1, 1], [], []>} : vector<8x64xf32>, vector<64x64xf32>, vector<8x64xf32> -> vector<8x64xf32>
    %c848 = arith.constant 848 : index
    %c0_108 = arith.constant 0 : index
    %253 = vector.load %arg4[%c848, %c0_108] : memref<1739x64xf32, #tpu.memory_space<vmem>>, vector<64x64xf32>
    %cst_109 = arith.constant dense<0.000000e+00> : vector<8x64xf32>
    %254 = tpu.matmul %250, %253, %cst_109 {dimension_numbers = #tpu.dot_dimension_numbers<[1], [0], [0], [1], [0, 0, 1, 1], [], []>} : vector<8x64xf32>, vector<64x64xf32>, vector<8x64xf32> -> vector<8x64xf32>
    %255 = arith.addf %252, %254 : vector<8x64xf32>
    %c1715 = arith.constant 1715 : index
    %c0_110 = arith.constant 0 : index
    %256 = vector.load %arg4[%c1715, %c0_110] : memref<1739x64xf32, #tpu.memory_space<vmem>>, vector<1x64xf32>
    %c1716 = arith.constant 1716 : index
    %c0_111 = arith.constant 0 : index
    %257 = vector.load %arg4[%c1716, %c0_111] : memref<1739x64xf32, #tpu.memory_space<vmem>>, vector<1x64xf32>
    %c1717 = arith.constant 1717 : index
    %c0_112 = arith.constant 0 : index
    %258 = vector.load %arg4[%c1717, %c0_112] : memref<1739x64xf32, #tpu.memory_space<vmem>>, vector<1x64xf32>
    %259 = vector.broadcast %256 : vector<1x64xf32> to vector<8x64xf32>
    %260 = arith.addf %255, %259 : vector<8x64xf32>
    %cst_113 = arith.constant 0.000000e+00 : f32
    %261 = vector.broadcast %cst_113 : f32 to vector<8x64xf32>
    %262 = arith.cmpf oge, %260, %261 : vector<8x64xf32>
    %cst_114 = arith.constant 0.00999999977 : f32
    %263 = vector.broadcast %cst_114 : f32 to vector<8x64xf32>
    %264 = arith.mulf %263, %260 : vector<8x64xf32>
    %265 = arith.select %262, %260, %264 : vector<8x64xi1>, vector<8x64xf32>
    %cst_115 = arith.constant dense<0.000000e+00> : vector<8xf32>
    %266 = vector.multi_reduction <add>, %265, %cst_115 [1] : vector<8x64xf32> to vector<8xf32>
    %267 = vector.shape_cast %266 : vector<8xf32> to vector<8x1xf32>
    %cst_116 = arith.constant 6.250000e-02 : f32
    %268 = vector.broadcast %cst_116 : f32 to vector<8x1xf32>
    %269 = arith.mulf %267, %268 : vector<8x1xf32>
    %270 = vector.broadcast %269 : vector<8x1xf32> to vector<8x64xf32>
    %271 = arith.subf %265, %270 : vector<8x64xf32>
    %272 = tpu.iota {dimensions = array<i32: 1>} : vector<8x64xi32>
    %c16_i32 = arith.constant 16 : i32
    %273 = vector.broadcast %c16_i32 : i32 to vector<8x64xi32>
    %274 = arith.cmpi slt, %272, %273 : vector<8x64xi32>
    %cst_117 = arith.constant 0.000000e+00 : f32
    %275 = vector.broadcast %cst_117 : f32 to vector<8x64xf32>
    %276 = arith.select %274, %271, %275 : vector<8x64xi1>, vector<8x64xf32>
    %277 = arith.mulf %276, %276 : vector<8x64xf32>
    %cst_118 = arith.constant dense<0.000000e+00> : vector<8xf32>
    %278 = vector.multi_reduction <add>, %277, %cst_118 [1] : vector<8x64xf32> to vector<8xf32>
    %279 = vector.shape_cast %278 : vector<8xf32> to vector<8x1xf32>
    %cst_119 = arith.constant 6.250000e-02 : f32
    %280 = vector.broadcast %cst_119 : f32 to vector<8x1xf32>
    %281 = arith.mulf %279, %280 : vector<8x1xf32>
    %cst_120 = arith.constant 9.99999974E-6 : f32
    %282 = vector.broadcast %cst_120 : f32 to vector<8x1xf32>
    %283 = arith.addf %281, %282 : vector<8x1xf32>
    %284 = math.rsqrt %283 : vector<8x1xf32>
    %285 = vector.broadcast %284 : vector<8x1xf32> to vector<8x64xf32>
    %286 = arith.mulf %271, %285 : vector<8x64xf32>
    %287 = vector.broadcast %257 : vector<1x64xf32> to vector<8x64xf32>
    %288 = arith.mulf %286, %287 : vector<8x64xf32>
    %289 = vector.broadcast %258 : vector<1x64xf32> to vector<8x64xf32>
    %290 = arith.addf %288, %289 : vector<8x64xf32>
    %291 = vector.extract_strided_slice %290 {offsets = [0, 0], sizes = [8, 16], strides = [1, 1]} : vector<8x64xf32> to vector<8x16xf32>
    %c0_121 = arith.constant 0 : index
    %c0_122 = arith.constant 0 : index
    %292 = vector.load %arg5[%c0_121, %c0_122] : memref<8x16xf32, #tpu.memory_space<vmem>>, vector<8x16xf32>
    tpu.vector_store %arg5[%c0_121, %c0_122], %291 {strides = array<i32>} : memref<8x16xf32, #tpu.memory_space<vmem>>, vector<8x16xf32>,
    %c912 = arith.constant 912 : index
    %c0_123 = arith.constant 0 : index
    %293 = vector.load %arg4[%c912, %c0_123] : memref<1739x64xf32, #tpu.memory_space<vmem>>, vector<64x64xf32>
    %cst_124 = arith.constant dense<0.000000e+00> : vector<8x64xf32>
    %294 = tpu.matmul %40, %293, %cst_124 {dimension_numbers = #tpu.dot_dimension_numbers<[1], [0], [0], [1], [0, 0, 1, 1], [], []>} : vector<8x64xf32>, vector<64x64xf32>, vector<8x64xf32> -> vector<8x64xf32>
    %c1718 = arith.constant 1718 : index
    %c0_125 = arith.constant 0 : index
    %295 = vector.load %arg4[%c1718, %c0_125] : memref<1739x64xf32, #tpu.memory_space<vmem>>, vector<1x64xf32>
    %c1719 = arith.constant 1719 : index
    %c0_126 = arith.constant 0 : index
    %296 = vector.load %arg4[%c1719, %c0_126] : memref<1739x64xf32, #tpu.memory_space<vmem>>, vector<1x64xf32>
    %c1720 = arith.constant 1720 : index
    %c0_127 = arith.constant 0 : index
    %297 = vector.load %arg4[%c1720, %c0_127] : memref<1739x64xf32, #tpu.memory_space<vmem>>, vector<1x64xf32>
    %298 = vector.broadcast %295 : vector<1x64xf32> to vector<8x64xf32>
    %299 = arith.addf %294, %298 : vector<8x64xf32>
    %cst_128 = arith.constant 0.000000e+00 : f32
    %300 = vector.broadcast %cst_128 : f32 to vector<8x64xf32>
    %301 = arith.cmpf oge, %299, %300 : vector<8x64xf32>
    %cst_129 = arith.constant 0.00999999977 : f32
    %302 = vector.broadcast %cst_129 : f32 to vector<8x64xf32>
    %303 = arith.mulf %302, %299 : vector<8x64xf32>
    %304 = arith.select %301, %299, %303 : vector<8x64xi1>, vector<8x64xf32>
    %cst_130 = arith.constant dense<0.000000e+00> : vector<8xf32>
    %305 = vector.multi_reduction <add>, %304, %cst_130 [1] : vector<8x64xf32> to vector<8xf32>
    %306 = vector.shape_cast %305 : vector<8xf32> to vector<8x1xf32>
    %cst_131 = arith.constant 6.400000e+01 : f32
    %307 = vector.broadcast %cst_131 : f32 to vector<8x1xf32>
    %308 = arith.divf %306, %307 : vector<8x1xf32>
    %309 = vector.broadcast %308 : vector<8x1xf32> to vector<8x64xf32>
    %310 = arith.subf %304, %309 : vector<8x64xf32>
    %311 = arith.mulf %310, %310 : vector<8x64xf32>
    %cst_132 = arith.constant dense<0.000000e+00> : vector<8xf32>
    %312 = vector.multi_reduction <add>, %311, %cst_132 [1] : vector<8x64xf32> to vector<8xf32>
    %313 = vector.shape_cast %312 : vector<8xf32> to vector<8x1xf32>
    %cst_133 = arith.constant 6.400000e+01 : f32
    %314 = vector.broadcast %cst_133 : f32 to vector<8x1xf32>
    %315 = arith.divf %313, %314 : vector<8x1xf32>
    %cst_134 = arith.constant 9.99999974E-6 : f32
    %316 = vector.broadcast %cst_134 : f32 to vector<8x1xf32>
    %317 = arith.addf %315, %316 : vector<8x1xf32>
    %318 = math.rsqrt %317 : vector<8x1xf32>
    %319 = vector.broadcast %318 : vector<8x1xf32> to vector<8x64xf32>
    %320 = arith.mulf %310, %319 : vector<8x64xf32>
    %321 = vector.broadcast %296 : vector<1x64xf32> to vector<8x64xf32>
    %322 = arith.mulf %320, %321 : vector<8x64xf32>
    %323 = vector.broadcast %297 : vector<1x64xf32> to vector<8x64xf32>
    %324 = arith.addf %322, %323 : vector<8x64xf32>
    %c976 = arith.constant 976 : index
    %c0_135 = arith.constant 0 : index
    %325 = vector.load %arg4[%c976, %c0_135] : memref<1739x64xf32, #tpu.memory_space<vmem>>, vector<64x64xf32>
    %cst_136 = arith.constant dense<0.000000e+00> : vector<8x64xf32>
    %326 = tpu.matmul %40, %325, %cst_136 {dimension_numbers = #tpu.dot_dimension_numbers<[1], [0], [0], [1], [0, 0, 1, 1], [], []>} : vector<8x64xf32>, vector<64x64xf32>, vector<8x64xf32> -> vector<8x64xf32>
    %c1040 = arith.constant 1040 : index
    %c0_137 = arith.constant 0 : index
    %327 = vector.load %arg4[%c1040, %c0_137] : memref<1739x64xf32, #tpu.memory_space<vmem>>, vector<64x64xf32>
    %cst_138 = arith.constant dense<0.000000e+00> : vector<8x64xf32>
    %328 = tpu.matmul %324, %327, %cst_138 {dimension_numbers = #tpu.dot_dimension_numbers<[1], [0], [0], [1], [0, 0, 1, 1], [], []>} : vector<8x64xf32>, vector<64x64xf32>, vector<8x64xf32> -> vector<8x64xf32>
    %329 = arith.addf %326, %328 : vector<8x64xf32>
    %c1721 = arith.constant 1721 : index
    %c0_139 = arith.constant 0 : index
    %330 = vector.load %arg4[%c1721, %c0_139] : memref<1739x64xf32, #tpu.memory_space<vmem>>, vector<1x64xf32>
    %c1722 = arith.constant 1722 : index
    %c0_140 = arith.constant 0 : index
    %331 = vector.load %arg4[%c1722, %c0_140] : memref<1739x64xf32, #tpu.memory_space<vmem>>, vector<1x64xf32>
    %c1723 = arith.constant 1723 : index
    %c0_141 = arith.constant 0 : index
    %332 = vector.load %arg4[%c1723, %c0_141] : memref<1739x64xf32, #tpu.memory_space<vmem>>, vector<1x64xf32>
    %333 = vector.broadcast %330 : vector<1x64xf32> to vector<8x64xf32>
    %334 = arith.addf %329, %333 : vector<8x64xf32>
    %cst_142 = arith.constant 0.000000e+00 : f32
    %335 = vector.broadcast %cst_142 : f32 to vector<8x64xf32>
    %336 = arith.cmpf oge, %334, %335 : vector<8x64xf32>
    %cst_143 = arith.constant 0.00999999977 : f32
    %337 = vector.broadcast %cst_143 : f32 to vector<8x64xf32>
    %338 = arith.mulf %337, %334 : vector<8x64xf32>
    %339 = arith.select %336, %334, %338 : vector<8x64xi1>, vector<8x64xf32>
    %cst_144 = arith.constant dense<0.000000e+00> : vector<8xf32>
    %340 = vector.multi_reduction <add>, %339, %cst_144 [1] : vector<8x64xf32> to vector<8xf32>
    %341 = vector.shape_cast %340 : vector<8xf32> to vector<8x1xf32>
    %cst_145 = arith.constant 6.400000e+01 : f32
    %342 = vector.broadcast %cst_145 : f32 to vector<8x1xf32>
    %343 = arith.divf %341, %342 : vector<8x1xf32>
    %344 = vector.broadcast %343 : vector<8x1xf32> to vector<8x64xf32>
    %345 = arith.subf %339, %344 : vector<8x64xf32>
    %346 = arith.mulf %345, %345 : vector<8x64xf32>
    %cst_146 = arith.constant dense<0.000000e+00> : vector<8xf32>
    %347 = vector.multi_reduction <add>, %346, %cst_146 [1] : vector<8x64xf32> to vector<8xf32>
    %348 = vector.shape_cast %347 : vector<8xf32> to vector<8x1xf32>
    %cst_147 = arith.constant 6.400000e+01 : f32
    %349 = vector.broadcast %cst_147 : f32 to vector<8x1xf32>
    %350 = arith.divf %348, %349 : vector<8x1xf32>
    %cst_148 = arith.constant 9.99999974E-6 : f32
    %351 = vector.broadcast %cst_148 : f32 to vector<8x1xf32>
    %352 = arith.addf %350, %351 : vector<8x1xf32>
    %353 = math.rsqrt %352 : vector<8x1xf32>
    %354 = vector.broadcast %353 : vector<8x1xf32> to vector<8x64xf32>
    %355 = arith.mulf %345, %354 : vector<8x64xf32>
    %356 = vector.broadcast %331 : vector<1x64xf32> to vector<8x64xf32>
    %357 = arith.mulf %355, %356 : vector<8x64xf32>
    %358 = vector.broadcast %332 : vector<1x64xf32> to vector<8x64xf32>
    %359 = arith.addf %357, %358 : vector<8x64xf32>
    %c1104 = arith.constant 1104 : index
    %c0_149 = arith.constant 0 : index
    %360 = vector.load %arg4[%c1104, %c0_149] : memref<1739x64xf32, #tpu.memory_space<vmem>>, vector<64x64xf32>
    %cst_150 = arith.constant dense<0.000000e+00> : vector<8x64xf32>
    %361 = tpu.matmul %324, %360, %cst_150 {dimension_numbers = #tpu.dot_dimension_numbers<[1], [0], [0], [1], [0, 0, 1, 1], [], []>} : vector<8x64xf32>, vector<64x64xf32>, vector<8x64xf32> -> vector<8x64xf32>
    %c1168 = arith.constant 1168 : index
    %c0_151 = arith.constant 0 : index
    %362 = vector.load %arg4[%c1168, %c0_151] : memref<1739x64xf32, #tpu.memory_space<vmem>>, vector<64x64xf32>
    %cst_152 = arith.constant dense<0.000000e+00> : vector<8x64xf32>
    %363 = tpu.matmul %359, %362, %cst_152 {dimension_numbers = #tpu.dot_dimension_numbers<[1], [0], [0], [1], [0, 0, 1, 1], [], []>} : vector<8x64xf32>, vector<64x64xf32>, vector<8x64xf32> -> vector<8x64xf32>
    %364 = arith.addf %361, %363 : vector<8x64xf32>
    %c1724 = arith.constant 1724 : index
    %c0_153 = arith.constant 0 : index
    %365 = vector.load %arg4[%c1724, %c0_153] : memref<1739x64xf32, #tpu.memory_space<vmem>>, vector<1x64xf32>
    %c1725 = arith.constant 1725 : index
    %c0_154 = arith.constant 0 : index
    %366 = vector.load %arg4[%c1725, %c0_154] : memref<1739x64xf32, #tpu.memory_space<vmem>>, vector<1x64xf32>
    %c1726 = arith.constant 1726 : index
    %c0_155 = arith.constant 0 : index
    %367 = vector.load %arg4[%c1726, %c0_155] : memref<1739x64xf32, #tpu.memory_space<vmem>>, vector<1x64xf32>
    %368 = vector.broadcast %365 : vector<1x64xf32> to vector<8x64xf32>
    %369 = arith.addf %364, %368 : vector<8x64xf32>
    %cst_156 = arith.constant 0.000000e+00 : f32
    %370 = vector.broadcast %cst_156 : f32 to vector<8x64xf32>
    %371 = arith.cmpf oge, %369, %370 : vector<8x64xf32>
    %cst_157 = arith.constant 0.00999999977 : f32
    %372 = vector.broadcast %cst_157 : f32 to vector<8x64xf32>
    %373 = arith.mulf %372, %369 : vector<8x64xf32>
    %374 = arith.select %371, %369, %373 : vector<8x64xi1>, vector<8x64xf32>
    %cst_158 = arith.constant dense<0.000000e+00> : vector<8xf32>
    %375 = vector.multi_reduction <add>, %374, %cst_158 [1] : vector<8x64xf32> to vector<8xf32>
    %376 = vector.shape_cast %375 : vector<8xf32> to vector<8x1xf32>
    %cst_159 = arith.constant 6.400000e+01 : f32
    %377 = vector.broadcast %cst_159 : f32 to vector<8x1xf32>
    %378 = arith.divf %376, %377 : vector<8x1xf32>
    %379 = vector.broadcast %378 : vector<8x1xf32> to vector<8x64xf32>
    %380 = arith.subf %374, %379 : vector<8x64xf32>
    %381 = arith.mulf %380, %380 : vector<8x64xf32>
    %cst_160 = arith.constant dense<0.000000e+00> : vector<8xf32>
    %382 = vector.multi_reduction <add>, %381, %cst_160 [1] : vector<8x64xf32> to vector<8xf32>
    %383 = vector.shape_cast %382 : vector<8xf32> to vector<8x1xf32>
    %cst_161 = arith.constant 6.400000e+01 : f32
    %384 = vector.broadcast %cst_161 : f32 to vector<8x1xf32>
    %385 = arith.divf %383, %384 : vector<8x1xf32>
    %cst_162 = arith.constant 9.99999974E-6 : f32
    %386 = vector.broadcast %cst_162 : f32 to vector<8x1xf32>
    %387 = arith.addf %385, %386 : vector<8x1xf32>
    %388 = math.rsqrt %387 : vector<8x1xf32>
    %389 = vector.broadcast %388 : vector<8x1xf32> to vector<8x64xf32>
    %390 = arith.mulf %380, %389 : vector<8x64xf32>
    %391 = vector.broadcast %366 : vector<1x64xf32> to vector<8x64xf32>
    %392 = arith.mulf %390, %391 : vector<8x64xf32>
    %393 = vector.broadcast %367 : vector<1x64xf32> to vector<8x64xf32>
    %394 = arith.addf %392, %393 : vector<8x64xf32>
    %c1232 = arith.constant 1232 : index
    %c0_163 = arith.constant 0 : index
    %395 = vector.load %arg4[%c1232, %c0_163] : memref<1739x64xf32, #tpu.memory_space<vmem>>, vector<8x64xf32>
    %cst_164 = arith.constant dense<0.000000e+00> : vector<8x64xf32>
    %396 = tpu.matmul %2, %395, %cst_164 {dimension_numbers = #tpu.dot_dimension_numbers<[1], [0], [0], [1], [0, 0, 1, 1], [], []>} : vector<8x8xf32>, vector<8x64xf32>, vector<8x64xf32> -> vector<8x64xf32>
    %c1240 = arith.constant 1240 : index
    %c0_165 = arith.constant 0 : index
    %397 = vector.load %arg4[%c1240, %c0_165] : memref<1739x64xf32, #tpu.memory_space<vmem>>, vector<64x64xf32>
    %cst_166 = arith.constant dense<0.000000e+00> : vector<8x64xf32>
    %398 = tpu.matmul %394, %397, %cst_166 {dimension_numbers = #tpu.dot_dimension_numbers<[1], [0], [0], [1], [0, 0, 1, 1], [], []>} : vector<8x64xf32>, vector<64x64xf32>, vector<8x64xf32> -> vector<8x64xf32>
    %399 = arith.addf %396, %398 : vector<8x64xf32>
    %c1727 = arith.constant 1727 : index
    %c0_167 = arith.constant 0 : index
    %400 = vector.load %arg4[%c1727, %c0_167] : memref<1739x64xf32, #tpu.memory_space<vmem>>, vector<1x64xf32>
    %c1728 = arith.constant 1728 : index
    %c0_168 = arith.constant 0 : index
    %401 = vector.load %arg4[%c1728, %c0_168] : memref<1739x64xf32, #tpu.memory_space<vmem>>, vector<1x64xf32>
    %c1729 = arith.constant 1729 : index
    %c0_169 = arith.constant 0 : index
    %402 = vector.load %arg4[%c1729, %c0_169] : memref<1739x64xf32, #tpu.memory_space<vmem>>, vector<1x64xf32>
    %403 = vector.broadcast %400 : vector<1x64xf32> to vector<8x64xf32>
    %404 = arith.addf %399, %403 : vector<8x64xf32>
    %cst_170 = arith.constant 0.000000e+00 : f32
    %405 = vector.broadcast %cst_170 : f32 to vector<8x64xf32>
    %406 = arith.cmpf oge, %404, %405 : vector<8x64xf32>
    %cst_171 = arith.constant 0.00999999977 : f32
    %407 = vector.broadcast %cst_171 : f32 to vector<8x64xf32>
    %408 = arith.mulf %407, %404 : vector<8x64xf32>
    %409 = arith.select %406, %404, %408 : vector<8x64xi1>, vector<8x64xf32>
    %cst_172 = arith.constant dense<0.000000e+00> : vector<8xf32>
    %410 = vector.multi_reduction <add>, %409, %cst_172 [1] : vector<8x64xf32> to vector<8xf32>
    %411 = vector.shape_cast %410 : vector<8xf32> to vector<8x1xf32>
    %cst_173 = arith.constant 6.400000e+01 : f32
    %412 = vector.broadcast %cst_173 : f32 to vector<8x1xf32>
    %413 = arith.divf %411, %412 : vector<8x1xf32>
    %414 = vector.broadcast %413 : vector<8x1xf32> to vector<8x64xf32>
    %415 = arith.subf %409, %414 : vector<8x64xf32>
    %416 = arith.mulf %415, %415 : vector<8x64xf32>
    %cst_174 = arith.constant dense<0.000000e+00> : vector<8xf32>
    %417 = vector.multi_reduction <add>, %416, %cst_174 [1] : vector<8x64xf32> to vector<8xf32>
    %418 = vector.shape_cast %417 : vector<8xf32> to vector<8x1xf32>
    %cst_175 = arith.constant 6.400000e+01 : f32
    %419 = vector.broadcast %cst_175 : f32 to vector<8x1xf32>
    %420 = arith.divf %418, %419 : vector<8x1xf32>
    %cst_176 = arith.constant 9.99999974E-6 : f32
    %421 = vector.broadcast %cst_176 : f32 to vector<8x1xf32>
    %422 = arith.addf %420, %421 : vector<8x1xf32>
    %423 = math.rsqrt %422 : vector<8x1xf32>
    %424 = vector.broadcast %423 : vector<8x1xf32> to vector<8x64xf32>
    %425 = arith.mulf %415, %424 : vector<8x64xf32>
    %426 = vector.broadcast %401 : vector<1x64xf32> to vector<8x64xf32>
    %427 = arith.mulf %425, %426 : vector<8x64xf32>
    %428 = vector.broadcast %402 : vector<1x64xf32> to vector<8x64xf32>
    %429 = arith.addf %427, %428 : vector<8x64xf32>
    %c1304 = arith.constant 1304 : index
    %c0_177 = arith.constant 0 : index
    %430 = vector.load %arg4[%c1304, %c0_177] : memref<1739x64xf32, #tpu.memory_space<vmem>>, vector<8x64xf32>
    %cst_178 = arith.constant dense<0.000000e+00> : vector<8x64xf32>
    %431 = tpu.matmul %2, %430, %cst_178 {dimension_numbers = #tpu.dot_dimension_numbers<[1], [0], [0], [1], [0, 0, 1, 1], [], []>} : vector<8x8xf32>, vector<8x64xf32>, vector<8x64xf32> -> vector<8x64xf32>
    %c1312 = arith.constant 1312 : index
    %c0_179 = arith.constant 0 : index
    %432 = vector.load %arg4[%c1312, %c0_179] : memref<1739x64xf32, #tpu.memory_space<vmem>>, vector<64x64xf32>
    %cst_180 = arith.constant dense<0.000000e+00> : vector<8x64xf32>
    %433 = tpu.matmul %394, %432, %cst_180 {dimension_numbers = #tpu.dot_dimension_numbers<[1], [0], [0], [1], [0, 0, 1, 1], [], []>} : vector<8x64xf32>, vector<64x64xf32>, vector<8x64xf32> -> vector<8x64xf32>
    %434 = arith.addf %431, %433 : vector<8x64xf32>
    %c1376 = arith.constant 1376 : index
    %c0_181 = arith.constant 0 : index
    %435 = vector.load %arg4[%c1376, %c0_181] : memref<1739x64xf32, #tpu.memory_space<vmem>>, vector<64x64xf32>
    %cst_182 = arith.constant dense<0.000000e+00> : vector<8x64xf32>
    %436 = tpu.matmul %429, %435, %cst_182 {dimension_numbers = #tpu.dot_dimension_numbers<[1], [0], [0], [1], [0, 0, 1, 1], [], []>} : vector<8x64xf32>, vector<64x64xf32>, vector<8x64xf32> -> vector<8x64xf32>
    %437 = arith.addf %434, %436 : vector<8x64xf32>
    %c1730 = arith.constant 1730 : index
    %c0_183 = arith.constant 0 : index
    %438 = vector.load %arg4[%c1730, %c0_183] : memref<1739x64xf32, #tpu.memory_space<vmem>>, vector<1x64xf32>
    %c1731 = arith.constant 1731 : index
    %c0_184 = arith.constant 0 : index
    %439 = vector.load %arg4[%c1731, %c0_184] : memref<1739x64xf32, #tpu.memory_space<vmem>>, vector<1x64xf32>
    %c1732 = arith.constant 1732 : index
    %c0_185 = arith.constant 0 : index
    %440 = vector.load %arg4[%c1732, %c0_185] : memref<1739x64xf32, #tpu.memory_space<vmem>>, vector<1x64xf32>
    %441 = vector.broadcast %438 : vector<1x64xf32> to vector<8x64xf32>
    %442 = arith.addf %437, %441 : vector<8x64xf32>
    %cst_186 = arith.constant 0.000000e+00 : f32
    %443 = vector.broadcast %cst_186 : f32 to vector<8x64xf32>
    %444 = arith.cmpf oge, %442, %443 : vector<8x64xf32>
    %cst_187 = arith.constant 0.00999999977 : f32
    %445 = vector.broadcast %cst_187 : f32 to vector<8x64xf32>
    %446 = arith.mulf %445, %442 : vector<8x64xf32>
    %447 = arith.select %444, %442, %446 : vector<8x64xi1>, vector<8x64xf32>
    %cst_188 = arith.constant dense<0.000000e+00> : vector<8xf32>
    %448 = vector.multi_reduction <add>, %447, %cst_188 [1] : vector<8x64xf32> to vector<8xf32>
    %449 = vector.shape_cast %448 : vector<8xf32> to vector<8x1xf32>
    %cst_189 = arith.constant 6.400000e+01 : f32
    %450 = vector.broadcast %cst_189 : f32 to vector<8x1xf32>
    %451 = arith.divf %449, %450 : vector<8x1xf32>
    %452 = vector.broadcast %451 : vector<8x1xf32> to vector<8x64xf32>
    %453 = arith.subf %447, %452 : vector<8x64xf32>
    %454 = arith.mulf %453, %453 : vector<8x64xf32>
    %cst_190 = arith.constant dense<0.000000e+00> : vector<8xf32>
    %455 = vector.multi_reduction <add>, %454, %cst_190 [1] : vector<8x64xf32> to vector<8xf32>
    %456 = vector.shape_cast %455 : vector<8xf32> to vector<8x1xf32>
    %cst_191 = arith.constant 6.400000e+01 : f32
    %457 = vector.broadcast %cst_191 : f32 to vector<8x1xf32>
    %458 = arith.divf %456, %457 : vector<8x1xf32>
    %cst_192 = arith.constant 9.99999974E-6 : f32
    %459 = vector.broadcast %cst_192 : f32 to vector<8x1xf32>
    %460 = arith.addf %458, %459 : vector<8x1xf32>
    %461 = math.rsqrt %460 : vector<8x1xf32>
    %462 = vector.broadcast %461 : vector<8x1xf32> to vector<8x64xf32>
    %463 = arith.mulf %453, %462 : vector<8x64xf32>
    %464 = vector.broadcast %439 : vector<1x64xf32> to vector<8x64xf32>
    %465 = arith.mulf %463, %464 : vector<8x64xf32>
    %466 = vector.broadcast %440 : vector<1x64xf32> to vector<8x64xf32>
    %467 = arith.addf %465, %466 : vector<8x64xf32>
    %c1440 = arith.constant 1440 : index
    %c0_193 = arith.constant 0 : index
    %468 = vector.load %arg4[%c1440, %c0_193] : memref<1739x64xf32, #tpu.memory_space<vmem>>, vector<64x64xf32>
    %cst_194 = arith.constant dense<0.000000e+00> : vector<8x64xf32>
    %469 = tpu.matmul %429, %468, %cst_194 {dimension_numbers = #tpu.dot_dimension_numbers<[1], [0], [0], [1], [0, 0, 1, 1], [], []>} : vector<8x64xf32>, vector<64x64xf32>, vector<8x64xf32> -> vector<8x64xf32>
    %c1504 = arith.constant 1504 : index
    %c0_195 = arith.constant 0 : index
    %470 = vector.load %arg4[%c1504, %c0_195] : memref<1739x64xf32, #tpu.memory_space<vmem>>, vector<64x64xf32>
    %cst_196 = arith.constant dense<0.000000e+00> : vector<8x64xf32>
    %471 = tpu.matmul %467, %470, %cst_196 {dimension_numbers = #tpu.dot_dimension_numbers<[1], [0], [0], [1], [0, 0, 1, 1], [], []>} : vector<8x64xf32>, vector<64x64xf32>, vector<8x64xf32> -> vector<8x64xf32>
    %472 = arith.addf %469, %471 : vector<8x64xf32>
    %c1733 = arith.constant 1733 : index
    %c0_197 = arith.constant 0 : index
    %473 = vector.load %arg4[%c1733, %c0_197] : memref<1739x64xf32, #tpu.memory_space<vmem>>, vector<1x64xf32>
    %c1734 = arith.constant 1734 : index
    %c0_198 = arith.constant 0 : index
    %474 = vector.load %arg4[%c1734, %c0_198] : memref<1739x64xf32, #tpu.memory_space<vmem>>, vector<1x64xf32>
    %c1735 = arith.constant 1735 : index
    %c0_199 = arith.constant 0 : index
    %475 = vector.load %arg4[%c1735, %c0_199] : memref<1739x64xf32, #tpu.memory_space<vmem>>, vector<1x64xf32>
    %476 = vector.broadcast %473 : vector<1x64xf32> to vector<8x64xf32>
    %477 = arith.addf %472, %476 : vector<8x64xf32>
    %cst_200 = arith.constant 0.000000e+00 : f32
    %478 = vector.broadcast %cst_200 : f32 to vector<8x64xf32>
    %479 = arith.cmpf oge, %477, %478 : vector<8x64xf32>
    %cst_201 = arith.constant 0.00999999977 : f32
    %480 = vector.broadcast %cst_201 : f32 to vector<8x64xf32>
    %481 = arith.mulf %480, %477 : vector<8x64xf32>
    %482 = arith.select %479, %477, %481 : vector<8x64xi1>, vector<8x64xf32>
    %cst_202 = arith.constant dense<0.000000e+00> : vector<8xf32>
    %483 = vector.multi_reduction <add>, %482, %cst_202 [1] : vector<8x64xf32> to vector<8xf32>
    %484 = vector.shape_cast %483 : vector<8xf32> to vector<8x1xf32>
    %cst_203 = arith.constant 6.400000e+01 : f32
    %485 = vector.broadcast %cst_203 : f32 to vector<8x1xf32>
    %486 = arith.divf %484, %485 : vector<8x1xf32>
    %487 = vector.broadcast %486 : vector<8x1xf32> to vector<8x64xf32>
    %488 = arith.subf %482, %487 : vector<8x64xf32>
    %489 = arith.mulf %488, %488 : vector<8x64xf32>
    %cst_204 = arith.constant dense<0.000000e+00> : vector<8xf32>
    %490 = vector.multi_reduction <add>, %489, %cst_204 [1] : vector<8x64xf32> to vector<8xf32>
    %491 = vector.shape_cast %490 : vector<8xf32> to vector<8x1xf32>
    %cst_205 = arith.constant 6.400000e+01 : f32
    %492 = vector.broadcast %cst_205 : f32 to vector<8x1xf32>
    %493 = arith.divf %491, %492 : vector<8x1xf32>
    %cst_206 = arith.constant 9.99999974E-6 : f32
    %494 = vector.broadcast %cst_206 : f32 to vector<8x1xf32>
    %495 = arith.addf %493, %494 : vector<8x1xf32>
    %496 = math.rsqrt %495 : vector<8x1xf32>
    %497 = vector.broadcast %496 : vector<8x1xf32> to vector<8x64xf32>
    %498 = arith.mulf %488, %497 : vector<8x64xf32>
    %499 = vector.broadcast %474 : vector<1x64xf32> to vector<8x64xf32>
    %500 = arith.mulf %498, %499 : vector<8x64xf32>
    %501 = vector.broadcast %475 : vector<1x64xf32> to vector<8x64xf32>
    %502 = arith.addf %500, %501 : vector<8x64xf32>
    %c1568 = arith.constant 1568 : index
    %c0_207 = arith.constant 0 : index
    %503 = vector.load %arg4[%c1568, %c0_207] : memref<1739x64xf32, #tpu.memory_space<vmem>>, vector<64x64xf32>
    %cst_208 = arith.constant dense<0.000000e+00> : vector<8x64xf32>
    %504 = tpu.matmul %467, %503, %cst_208 {dimension_numbers = #tpu.dot_dimension_numbers<[1], [0], [0], [1], [0, 0, 1, 1], [], []>} : vector<8x64xf32>, vector<64x64xf32>, vector<8x64xf32> -> vector<8x64xf32>
    %c1632 = arith.constant 1632 : index
    %c0_209 = arith.constant 0 : index
    %505 = vector.load %arg4[%c1632, %c0_209] : memref<1739x64xf32, #tpu.memory_space<vmem>>, vector<64x64xf32>
    %cst_210 = arith.constant dense<0.000000e+00> : vector<8x64xf32>
    %506 = tpu.matmul %502, %505, %cst_210 {dimension_numbers = #tpu.dot_dimension_numbers<[1], [0], [0], [1], [0, 0, 1, 1], [], []>} : vector<8x64xf32>, vector<64x64xf32>, vector<8x64xf32> -> vector<8x64xf32>
    %507 = arith.addf %504, %506 : vector<8x64xf32>
    %c1736 = arith.constant 1736 : index
    %c0_211 = arith.constant 0 : index
    %508 = vector.load %arg4[%c1736, %c0_211] : memref<1739x64xf32, #tpu.memory_space<vmem>>, vector<1x64xf32>
    %c1737 = arith.constant 1737 : index
    %c0_212 = arith.constant 0 : index
    %509 = vector.load %arg4[%c1737, %c0_212] : memref<1739x64xf32, #tpu.memory_space<vmem>>, vector<1x64xf32>
    %c1738 = arith.constant 1738 : index
    %c0_213 = arith.constant 0 : index
    %510 = vector.load %arg4[%c1738, %c0_213] : memref<1739x64xf32, #tpu.memory_space<vmem>>, vector<1x64xf32>
    %511 = vector.broadcast %508 : vector<1x64xf32> to vector<8x64xf32>
    %512 = arith.addf %507, %511 : vector<8x64xf32>
    %cst_214 = arith.constant 0.000000e+00 : f32
    %513 = vector.broadcast %cst_214 : f32 to vector<8x64xf32>
    %514 = arith.cmpf oge, %512, %513 : vector<8x64xf32>
    %cst_215 = arith.constant 0.00999999977 : f32
    %515 = vector.broadcast %cst_215 : f32 to vector<8x64xf32>
    %516 = arith.mulf %515, %512 : vector<8x64xf32>
    %517 = arith.select %514, %512, %516 : vector<8x64xi1>, vector<8x64xf32>
    %cst_216 = arith.constant dense<0.000000e+00> : vector<8xf32>
    %518 = vector.multi_reduction <add>, %517, %cst_216 [1] : vector<8x64xf32> to vector<8xf32>
    %519 = vector.shape_cast %518 : vector<8xf32> to vector<8x1xf32>
    %cst_217 = arith.constant 6.250000e-02 : f32
    %520 = vector.broadcast %cst_217 : f32 to vector<8x1xf32>
    %521 = arith.mulf %519, %520 : vector<8x1xf32>
    %522 = vector.broadcast %521 : vector<8x1xf32> to vector<8x64xf32>
    %523 = arith.subf %517, %522 : vector<8x64xf32>
    %524 = tpu.iota {dimensions = array<i32: 1>} : vector<8x64xi32>
    %c16_i32_218 = arith.constant 16 : i32
    %525 = vector.broadcast %c16_i32_218 : i32 to vector<8x64xi32>
    %526 = arith.cmpi slt, %524, %525 : vector<8x64xi32>
    %cst_219 = arith.constant 0.000000e+00 : f32
    %527 = vector.broadcast %cst_219 : f32 to vector<8x64xf32>
    %528 = arith.select %526, %523, %527 : vector<8x64xi1>, vector<8x64xf32>
    %529 = arith.mulf %528, %528 : vector<8x64xf32>
    %cst_220 = arith.constant dense<0.000000e+00> : vector<8xf32>
    %530 = vector.multi_reduction <add>, %529, %cst_220 [1] : vector<8x64xf32> to vector<8xf32>
    %531 = vector.shape_cast %530 : vector<8xf32> to vector<8x1xf32>
    %cst_221 = arith.constant 6.250000e-02 : f32
    %532 = vector.broadcast %cst_221 : f32 to vector<8x1xf32>
    %533 = arith.mulf %531, %532 : vector<8x1xf32>
    %cst_222 = arith.constant 9.99999974E-6 : f32
    %534 = vector.broadcast %cst_222 : f32 to vector<8x1xf32>
    %535 = arith.addf %533, %534 : vector<8x1xf32>
    %536 = math.rsqrt %535 : vector<8x1xf32>
    %537 = vector.broadcast %536 : vector<8x1xf32> to vector<8x64xf32>
    %538 = arith.mulf %523, %537 : vector<8x64xf32>
    %539 = vector.broadcast %509 : vector<1x64xf32> to vector<8x64xf32>
    %540 = arith.mulf %538, %539 : vector<8x64xf32>
    %541 = vector.broadcast %510 : vector<1x64xf32> to vector<8x64xf32>
    %542 = arith.addf %540, %541 : vector<8x64xf32>
    %543 = vector.extract_strided_slice %542 {offsets = [0, 0], sizes = [8, 16], strides = [1, 1]} : vector<8x64xf32> to vector<8x16xf32>
    %c0_223 = arith.constant 0 : index
    %c0_224 = arith.constant 0 : index
    %544 = vector.load %arg6[%c0_223, %c0_224] : memref<8x16xf32, #tpu.memory_space<vmem>>, vector<8x16xf32>
    tpu.vector_store %arg6[%c0_223, %c0_224], %543 {strides = array<i32>} : memref<8x16xf32, #tpu.memory_space<vmem>>, vector<8x16xf32>,
    return
  }
}

</mosaic_0001>

<bundles_post_ra>
// kernel: ore_forward.1
= control target key start
LH: loop header
LB: loop body
LE: loop exit
PB: predicated region body
PF: predicated region fallthrough
CT: control target
= control target key end

     0   :  { %12 = vsyncpa [#allocation3], 0  ;;  %v4276_v3 = vmov 0.0|0.0   ;;  %vm4277_vm0 = vmmov 0   ;;  %v4278_v9 = vmov 0.0   ;;  %s5424_s0 = inlined_call_operand.vmem [shape: f32[8,32], index: 0, kind: input, shape index: {}]   ;;  %s5425_s1 = inlined_call_operand.vmem [shape: f32[8,16], index: 1, kind: input, shape index: {}]   ;;  %s5426_s2 = inlined_call_operand.vmem [shape: f32[8,8], index: 2, kind: input, shape index: {}]   ;;  %s5427_s3 = inlined_call_operand.vmem [shape: f32[51,128], index: 3, kind: input, shape index: {}]   ;;  %s5428_s4 = inlined_call_operand.vmem [shape: f32[1739,64], index: 4, kind: input, shape index: {}]   ;;  %s5429_s5 = inlined_call_operand.hbm [shape: f32[8,16], index: 5, kind: output, shape index: {0}]   ;;  %s5430_s6 = inlined_call_operand.hbm [shape: f32[8,16], index: 6, kind: output, shape index: {1}]  }
   0x1   :  { %v27_v0 = vld [vmem:[%s5427_s3] sm:$0xff]  ;;  %v28_v1 = vld [vmem:[%s5427_s3 + $0x8] sm:$0xff]  ;;  %3873 = vmatprep.subr.bf16.mxu1 %v4276_v3  ;;  %3870 = vmatprep.subr.bf16.mxu0 %v4276_v3  ;;  %v29_v6 = vld [vmem:[%s5427_s3 + $0x10] sm:$0xff] }
   0x2   :  { %v31_v2 = vld [vmem:[%s5427_s3 + $0x20] sm:$0xff]  ;;  %v3874_v4 = vpack.c.bf16 %v28_v1, %v27_v0  ;;  %v32_v5 = vld [vmem:[%s5427_s3 + $0x28] sm:$0xff]  ;;  %v30_v7 = vld [vmem:[%s5427_s3 + $0x18] sm:$0xff]  ;;  %3345 = vmatprep.mubr.msk.f32.mxu0 %vm4277_vm0, %v4278_v9  ;;  %3356 = vmatprep.mubr.msk.f32.mxu1 %vm4277_vm0, %v4278_v9 }
   0x3   :  { %v3871_v8 = vpack.c.bf16 %v32_v5, %v31_v2 }
   0x4   :  { %13 = vsyncpa [#allocation5], 0  ;;  %3875 = vmatpush3.bf16.msra.mxu1 %v3874_v4  ;;  %v3877_v10 = vpack.c.bf16 %v30_v7, %v29_v6  ;;  %v25_v11 = vld [vmem:[%s5425_s1] sm:$0xff]  ;;  %vm33_vm1 = vcmask 130048   ;;  %vm107_vm2 = vcmask 261120   ;;  %v213_v25 = vld [vmem:[%s5428_s4 + $0x8] sm:$0xff] }
   0x5   :  { %3872 = vmatpush3.bf16.msra.mxu0 %v3871_v8  ;;  %3876 = vmatprep.subr.bf16.mxu1 %v4276_v3  ;;  %v24_v12 = vld [vmem:[%s5424_s0] sm:$0xff]  ;;  %v3018_v16 = vld [vmem:[%s5427_s3 + $0x30] ss:$0 sm:$0xff]  ;;  %v215_v28 = vld [vmem:[%s5428_s4 + $0x18] sm:$0xff]  ;;  %vm319_vm3 = vcmask 523264   ;;  %vm888_vm7 = vcmask 64512  }
   0x6   :  { %3879 = vmatprep.subr.bf16.mxu0 %v4276_v3  ;;  %v212_v24 = vld [vmem:[%s5428_s4] sm:$0xff]  ;;  %v214_v27 = vld [vmem:[%s5428_s4 + $0x10] sm:$0xff]  ;;  %v217_v31 = vld [vmem:[%s5428_s4 + $0x28] sm:$0xff]  ;;  %s4279_s27 = smov [#allocation2]  }
   0x7   :  { %v3880_v26 = vpack.c.bf16 %v213_v25, %v212_v24  ;;  %v3883_v29 = vpack.c.bf16 %v215_v28, %v214_v27  ;;  %v216_v30 = vld [vmem:[%s5428_s4 + $0x20] sm:$0xff]  ;;  %v218_v33 = vld [vmem:[%s5428_s4 + $0x30] sm:$0xff]  ;;  %v219_v34 = vld [vmem:[%s5428_s4 + $0x38] sm:$0xff] }
   0x8   :  { %3878 = vmatpush3.bf16.msra.mxu1 %v3877_v10  ;;  %3346 = vmatmul.mubr.msk.f32.vlgmr.msra.gmra.mrb[0].mxu0 %vm33_vm1, %v25_v11  ;;  %v3886_v32 = vpack.c.bf16 %v217_v31, %v216_v30  ;;  %v3889_v35 = vpack.c.bf16 %v219_v34, %v218_v33  ;;  %v220_v36 = vld [vmem:[%s5428_s4 + $0x40] sm:$0xff]  ;;  %v221_v37 = vld [vmem:[%s5428_s4 + $0x48] sm:$0xff]  ;;  %v222_v39 = vld [vmem:[%s5428_s4 + $0x50] sm:$0xff] }
   0x9   :  { %3391 = vmatprep.mubr.msk.f32.mxu0 %vm4277_vm0, %v4278_v9  ;;  %3903 = vmatprep.subr.bf16.mxu1 %v4276_v3  ;;  %v3892_v38 = vpack.c.bf16 %v221_v37, %v220_v36  ;;  %v223_v40 = vld [vmem:[%s5428_s4 + $0x58] sm:$0xff]  ;;  %v224_v42 = vld [vmem:[%s5428_s4 + $0x60] sm:$0xff]  ;;  %v225_v43 = vld [vmem:[%s5428_s4 + $0x68] sm:$0xff] }
   0xa   :  { %3881 = vmatpush3.bf16.msra.mxu0 %v3880_v26  ;;  %v3895_v41 = vpack.c.bf16 %v223_v40, %v222_v39  ;;  %v3898_v44 = vpack.c.bf16 %v225_v43, %v224_v42  ;;  %v226_v45 = vld [vmem:[%s5428_s4 + $0x70] sm:$0xff]  ;;  %v227_v46 = vld [vmem:[%s5428_s4 + $0x78] sm:$0xff]  ;;  %v304_v48 = vld [vmem:[%s5428_s4 + $0x80] sm:$0xff] }
   0xb   :  { %3357 = vmatmul.mubr.msk.f32.vlgmr.msra.gmra.mrb[0].mxu1 %vm107_vm2, %v24_v12  ;;  %3882 = vmatprep.subr.bf16.mxu0 %v4276_v3  ;;  %v3901_v47 = vpack.c.bf16 %v227_v46, %v226_v45  ;;  %v305_v49 = vld [vmem:[%s5428_s4 + $0x88] sm:$0xff]  ;;  %v306_v51 = vld [vmem:[%s5428_s4 + $0x90] sm:$0xff]  ;;  %v307_v52 = vld [vmem:[%s5428_s4 + $0x98] sm:$0xff] }
   0xc   :  { %3410 = vmatprep.mubr.msk.f32.mxu1 %vm4277_vm0, %v4278_v9  ;;  %v3904_v50 = vpack.c.bf16 %v305_v49, %v304_v48  ;;  %v3907_v53 = vpack.c.bf16 %v307_v52, %v306_v51  ;;  %v308_v54 = vld [vmem:[%s5428_s4 + $0xa0] sm:$0xff]  ;;  %v309_v55 = vld [vmem:[%s5428_s4 + $0xa8] sm:$0xff]  ;;  %v3019_v61 = vld [vmem:[%s5427_s3 + $0x31] ss:$0 sm:$0xff] }
   0xd   :  { %v3910_v56 = vpack.c.bf16 %v309_v55, %v308_v54  ;;  %v3020_v63 = vld [vmem:[%s5427_s3 + $0x32] ss:$0 sm:$0xff]  ;;  %v420_v2 = vld [vmem:[%s5428_s4 + $0xc0] sm:$0xff]  ;;  %v421_v4 = vld [vmem:[%s5428_s4 + $0xc8] sm:$0xff] }
   0xe   :  { %3884 = vmatpush3.bf16.msra.mxu0 %v3883_v29  ;;  %3905 = vmatpush3.bf16.msra.mxu1 %v3904_v50  ;;  %v3928_v5 = vpack.c.bf16 %v421_v4, %v420_v2  ;;  %v422_v6 = vld [vmem:[%s5428_s4 + $0xd0] sm:$0xff]  ;;  %v423_v7 = vld [vmem:[%s5428_s4 + $0xd8] sm:$0xff]  ;;  %v424_v11 = vld [vmem:[%s5428_s4 + $0xe0] sm:$0xff] }
   0xf   :  { %3885 = vmatprep.subr.bf16.mxu0 %v4276_v3  ;;  %3906 = vmatprep.subr.bf16.mxu1 %v4276_v3  ;;  %v3931_v10 = vpack.c.bf16 %v423_v7, %v422_v6  ;;  %v425_v12 = vld [vmem:[%s5428_s4 + $0xe8] sm:$0xff]  ;;  %v3022_v25 = vld [vmem:[%s5428_s4 + $0x6a1] ss:$0 sm:$0xff]  ;;  %v430_v45 = vld [vmem:[%s5428_s4 + $0x110] sm:$0xff] }
  0x10   :  { %v428_v39 = vld [vmem:[%s5428_s4 + $0x100] sm:$0xff]  ;;  %v429_v40 = vld [vmem:[%s5428_s4 + $0x108] sm:$0xff]  ;;  %v431_v46 = vld [vmem:[%s5428_s4 + $0x118] sm:$0xff] }
  0x11   :  { %v3916_v42 = vpack.c.bf16 %v429_v40, %v428_v39  ;;  %v614_v43 = vld [vmem:[%s5428_s4 + $0x148] sm:$0xff]  ;;  %v3919_v48 = vpack.c.bf16 %v431_v46, %v430_v45  ;;  %v616_v49 = vld [vmem:[%s5428_s4 + $0x158] sm:$0xff]  ;;  %v432_v51 = vld [vmem:[%s5428_s4 + $0x120] sm:$0xff] }
  0x12   :  { %3887 = vmatpush3.bf16.msra.mxu0 %v3886_v32  ;;  %3908 = vmatpush3.bf16.msra.mxu1 %v3907_v53  ;;  %v433_v52 = vld [vmem:[%s5428_s4 + $0x128] sm:$0xff]  ;;  %v617_v53 = vld [vmem:[%s5428_s4 + $0x160] sm:$0xff] }
  0x13   :  { %3888 = vmatprep.subr.bf16.mxu0 %v4276_v3  ;;  %3909 = vmatprep.subr.bf16.mxu1 %v4276_v3  ;;  %v3922_v54 = vpack.c.bf16 %v433_v52, %v432_v51  ;;  %v618_v55 = vld [vmem:[%s5428_s4 + $0x168] sm:$0xff]  ;;  %v3024_v4 = vld [vmem:[%s5428_s4 + $0x6a2] ss:$0 sm:$0xff]  ;;  %v3025_v6 = vld [vmem:[%s5428_s4 + $0x6a3] ss:$0 sm:$0xff] }
  0x16   :  { %3890 = vmatpush3.bf16.msra.mxu0 %v3889_v35  ;;  %3911 = vmatpush3.bf16.msra.mxu1 %v3910_v56  ;;  %v3958_v56 = vpack.c.bf16 %v618_v55, %v617_v53 }
  0x17   :  { %3891 = vmatprep.subr.bf16.mxu0 %v4276_v3  ;;  %3912 = vmatprep.subr.bf16.mxu1 %v4276_v3 }
  0x1a   :  { %3893 = vmatpush3.bf16.msra.mxu0 %v3892_v38 }
  0x1b   :  { %3894 = vmatprep.subr.bf16.mxu0 %v4276_v3 }
  0x1e   :  { %3896 = vmatpush3.bf16.msra.mxu0 %v3895_v41  ;;  %v613_v41 = vld [vmem:[%s5428_s4 + $0x140] sm:$0xff] }
  0x1f   :  { %3897 = vmatprep.subr.bf16.mxu0 %v4276_v3 }
  0x22   :  { %3899 = vmatpush3.bf16.msra.mxu0 %v3898_v44  ;;  %v3952_v44 = vpack.c.bf16 %v614_v43, %v613_v41 }
  0x23   :  { %3900 = vmatprep.subr.bf16.mxu0 %v4276_v3 }
  0x26   :  { %3902 = vmatpush3.bf16.msra.mxu0 %v3901_v47  ;;  %v615_v47 = vld [vmem:[%s5428_s4 + $0x150] sm:$0xff] }
  0x27   :  { %3927 = vmatprep.subr.bf16.mxu0 %v4276_v3  ;;  %v3955_v50 = vpack.c.bf16 %v616_v49, %v615_v47 }
  0xdb   :  { %v103_v13 = vpop.f32.mrb[0].mxu0 }
  0xdc   :  { %v3347_v14 = vpop.f32.mrb[1].mxu0 }
  0xdd   :  { %v310_v14 = vld [vmem:[%s5428_s4 + $0xb0] sm:$0xff] }
  0xde   :  { %v177_v15 = vpop.f32.mrb[0].mxu1 }
  0xdf   :  { %v178_v17 = vadd.f32 %v177_v15, %v103_v13  ;;  %v3358_v18 = vpop.f32.mrb[1].mxu1  ;;  %v3934_v13 = vpack.c.bf16 %v425_v12, %v424_v11  ;;  %v311_v15 = vld [vmem:[%s5428_s4 + $0xb8] sm:$0xff]  ;;  %v3028_v11 = vld [vmem:[%s5428_s4 + $0x6a4] ss:$0 sm:$0xff] }
  0xe0   :  { %v427_v18 = vld [vmem:[%s5428_s4 + $0xf8] sm:$0xff] }
  0xe1   :  { %v186_v19 = vadd.f32 %v3018_v16, %v178_v17  ;;  %v426_v16 = vld [vmem:[%s5428_s4 + $0xf0] sm:$0xff]  ;;  %v3913_v17 = vpack.c.bf16 %v311_v15, %v310_v14 }
  0xe3   :  { %189 = vadd.xlane.f32.xlu0 %v186_v19  ;;  %3914 = vmatpush3.bf16.msra.mxu1 %v3913_v17 }
  0xe4   :  { %3915 = vmatprep.subr.bf16.mxu1 %v4276_v3 }
 0x170   :  { %v190_v20 = vpop.xlane.xlu0 %189 }
 0x171   :  { %v192_v21 = vmul.f32 0.0078125, %v190_v20  ;;  %v3021_v20 = vld [vmem:[%s5428_s4 + $0x6a0] ss:$0 sm:$0xff] }
 0x173   :  { %v4357_v22 = vsub.f32 %v186_v19, %v192_v21  ;;  %v3937_v19 = vpack.c.bf16 %v427_v18, %v426_v16 }
 0x175   :  { %v194_v23 = vmul.f32 %v4357_v22, %v4357_v22 }
 0x177   :  { %195 = vadd.xlane.f32.xlu0 %v194_v23 }
 0x204   :  { %v196_v57 = vpop.xlane.xlu0 %195 }
 0x205   :  { %v197_v58 = vmul.f32 0.0078125, %v196_v57  ;;  %v434_v57 = vld [vmem:[%s5428_s4 + $0x130] sm:$0xff] }
 0x207   :  { %v198_v59 = vadd.f32 1e-05, %v197_v58  ;;  %v435_v58 = vld [vmem:[%s5428_s4 + $0x138] sm:$0xff] }
 0x209   :  { %4196 = vrsqrt.f32 %v198_v59  ;;  %v619_v59 = vld [vmem:[%s5428_s4 + $0x170] sm:$0xff] }
 0x213   :  { %v4197_v60 = vpop.eup %4196 }
 0x214   :  { %v200_v62 = vmul.f32 %v4197_v60, %v4357_v22  ;;  %v3925_v60 = vpack.c.bf16 %v435_v58, %v434_v57 }
 0x216   :  { %v205_v0 = vmul.f32 %v3019_v61, %v200_v62  ;;  %v620_v61 = vld [vmem:[%s5428_s4 + $0x178] sm:$0xff] }
 0x217   :  { %v3961_v62 = vpack.c.bf16 %v620_v61, %v619_v59  ;;  %v807_v61 = vld [vmem:[%s5428_s4 + $0x1c8] sm:$0xff] }
 0x218   :  { %v210_v1 = vadd.f32 %v3020_v63, %v205_v0 }
 0x21a   :  { %4198 = vtanh.f32 %v210_v1 }
 0x224   :  { %v4199_v8 = vpop.eup %4198 }
 0x225   :  { %3392 = vmatmul.mubr.f32.vlgmr.msra.gmra.mrb[2].mxu0 %v4199_v8 }
 0x226   :  { %3929 = vmatpush3.bf16.msra.mxu0 %v3928_v5  ;;  %3448 = vmatprep.mubr.msk.f32.mxu0 %vm4277_vm0, %v4278_v9 }
 0x227   :  { %3930 = vmatprep.subr.bf16.mxu0 %v4276_v3 }
 0x22a   :  { %3932 = vmatpush3.bf16.msra.mxu0 %v3931_v10 }
 0x22b   :  { %3933 = vmatprep.subr.bf16.mxu0 %v4276_v3 }
 0x22e   :  { %3935 = vmatpush3.bf16.msra.mxu0 %v3934_v13 }
 0x22f   :  { %3936 = vmatprep.subr.bf16.mxu0 %v4276_v3 }
 0x232   :  { %3938 = vmatpush3.bf16.msra.mxu0 %v3937_v19 }
 0x233   :  { %3951 = vmatprep.subr.bf16.mxu0 %v4276_v3 }
 0x2f8   :  { %v299_v21 = vpop.f32.mrb[2].mxu0 }
 0x2f9   :  { %v300_v22 = vadd.f32 %v3021_v20, %v299_v21  ;;  %v3393_v23 = vpop.f32.mrb[3].mxu0 }
 0x2fb   :  { %v4485_v24 = vmax.f32 %v300_v22, 0.0 }
 0x2fd   :  { %3411 = vmatmul.mubr.msk.f32.vlgmr.msra.gmra.mrb[2].mxu1 %vm319_vm3, %v4485_v24  ;;  %3449 = vmatmul.mubr.msk.f32.vlgmr.msra.gmra.mrb[4].mxu0 %vm319_vm3, %v4485_v24 }
 0x2fe   :  { %3429 = vmatprep.mubr.msk.f32.mxu1 %vm4277_vm0, %v4278_v9  ;;  %3486 = vmatprep.mubr.msk.f32.mxu0 %vm4277_vm0, %v4278_v9 }
 0x2ff   :  { %3917 = vmatpush3.bf16.msra.mxu1 %v3916_v42  ;;  %3953 = vmatpush3.bf16.msra.mxu0 %v3952_v44  ;;  %v3029_v42 = vld [vmem:[%s5428_s4 + $0x6a5] ss:$0 sm:$0xff]  ;;  %v3030_v44 = vld [vmem:[%s5428_s4 + $0x6a6] ss:$0 sm:$0xff] }
 0x300   :  { %3918 = vmatprep.subr.bf16.mxu1 %v4276_v3  ;;  %3954 = vmatprep.subr.bf16.mxu0 %v4276_v3 }
 0x303   :  { %3920 = vmatpush3.bf16.msra.mxu1 %v3919_v48  ;;  %3956 = vmatpush3.bf16.msra.mxu0 %v3955_v50  ;;  %v3033_v48 = vld [vmem:[%s5428_s4 + $0x6a7] ss:$0 sm:$0xff] }
 0x304   :  { %3921 = vmatprep.subr.bf16.mxu1 %v4276_v3  ;;  %3957 = vmatprep.subr.bf16.mxu0 %v4276_v3 }
 0x307   :  { %3923 = vmatpush3.bf16.msra.mxu1 %v3922_v54  ;;  %3959 = vmatpush3.bf16.msra.mxu0 %v3958_v56 }
 0x308   :  { %3924 = vmatprep.subr.bf16.mxu1 %v4276_v3  ;;  %3960 = vmatprep.subr.bf16.mxu0 %v4276_v3 }
 0x30b   :  { %3926 = vmatpush3.bf16.msra.mxu1 %v3925_v60  ;;  %3962 = vmatpush3.bf16.msra.mxu0 %v3961_v62  ;;  %v806_v60 = vld [vmem:[%s5428_s4 + $0x1c0] sm:$0xff]  ;;  %v808_v62 = vld [vmem:[%s5428_s4 + $0x1d0] sm:$0xff] }
 0x30c   :  { %3939 = vmatprep.subr.bf16.mxu1 %v4276_v3  ;;  %3508 = vmatprep.subr.mxu0 %v4278_v9 }
 0x3d0   :  { %v389_v26 = vpop.f32.mrb[2].mxu1  ;;  %v4498_v27 = vpop.f32.mrb[4].mxu0 }
 0x3d1   :  { %v390_v28 = vadd.f32 %v3022_v25, %v389_v26  ;;  %v3412_v29 = vpop.f32.mrb[3].mxu1  ;;  %v3450_v30 = vpop.f32.mrb[5].mxu0  ;;  %v621_v26 = vld [vmem:[%s5428_s4 + $0x180] sm:$0xff] }
 0x3d2   :  { %v623_v29 = vld [vmem:[%s5428_s4 + $0x190] sm:$0xff]  ;;  %v624_v30 = vld [vmem:[%s5428_s4 + $0x198] sm:$0xff] }
 0x3d3   :  { %v394_v31 = vmul.f32 0.01, %v390_v28  ;;  %vm393_vm4 = vcmp.ge.f32.partialorder %v390_v28, 0.0 }
 0x3d5   :  { %v395_v32 = vsel %vm393_vm4, %v390_v28, %v394_v31  ;;  %v3943_v31 = vpack.c.bf16 %v624_v30, %v623_v29  ;;  %v3034_v29 = vld [vmem:[%s5428_s4 + $0x6a8] ss:$0 sm:$0xff] }
 0x3d6   :  { %v396_v33 = vsel %vm319_vm3, %v395_v32, 0.0 }
 0x3d7   :  { %397 = vadd.xlane.f32.xlu1 %v396_v33  ;;  %v626_v33 = vld [vmem:[%s5428_s4 + $0x1a8] sm:$0xff] }
 0x464   :  { %v398_v34 = vpop.xlane.xlu1 %397 }
 0x465   :  { %v400_v35 = vmul.f32 0.015625, %v398_v34 }
 0x467   :  { %v401_v36 = vsub.f32 %v395_v32, %v400_v35  ;;  %v625_v32 = vld [vmem:[%s5428_s4 + $0x1a0] sm:$0xff]  ;;  %v627_v35 = vld [vmem:[%s5428_s4 + $0x1b0] sm:$0xff] }
 0x468   :  { %v3946_v34 = vpack.c.bf16 %v626_v33, %v625_v32 }
 0x469   :  { %v402_v37 = vmul.f32 %v401_v36, %v401_v36 }
 0x46b   :  { %v403_v38 = vsel %vm319_vm3, %v402_v37, 0.0 }
 0x46c   :  { %404 = vadd.xlane.f32.xlu1 %v403_v38 }
 0x4f9   :  { %v405_v63 = vpop.xlane.xlu1 %404 }
 0x4fa   :  { %v406_v0 = vmul.f32 0.015625, %v405_v63  ;;  %v3964_v63 = vpack.c.bf16 %v808_v62, %v807_v61  ;;  %v1149_v61 = vld [vmem:[%s5428_s4 + $0x270] sm:$0xff]  ;;  %v1150_v62 = vld [vmem:[%s5428_s4 + $0x278] sm:$0xff] }
 0x4fc   :  { %v407_v1 = vadd.f32 1e-05, %v406_v0  ;;  %v997_v0 = vld [vmem:[%s5428_s4 + $0x210] sm:$0xff] }
 0x4fe   :  { %4200 = vrsqrt.f32 %v407_v1  ;;  %v998_v1 = vld [vmem:[%s5428_s4 + $0x218] sm:$0xff] }
 0x508   :  { %v4201_v2 = vpop.eup %4200 }
 0x509   :  { %v409_v5 = vmul.f32 %v4201_v2, %v401_v36  ;;  %v628_v36 = vld [vmem:[%s5428_s4 + $0x1b8] sm:$0xff]  ;;  %v4637_v2 = vld [vmem:[%s5426_s2] sm:$0xff]  ;;  %s2994_s2 = sshll.u32 %s4279_s27, 4  ;;  %s2995_s2 = int_to_ptr.vmem [resolvable:$true] %s2994_s2 }
 0x50a   :  { %v3949_v37 = vpack.c.bf16 %v628_v36, %v627_v35  ;;  %s4228_s28 = scalar_lea.vmem %s2995_s2, 128  ;;  %p4233_p1 = scmp.lt.s32.totalorder %s2995_s2, %s2995_s2 }
 0x50b   :  { %v414_v7 = vmul.f32 %v3024_v4, %v409_v5  ;;  %v3976_v4 = vpack.c.bf16 %v998_v1, %v997_v0  ;;  %v809_v5 = vld [vmem:[%s5428_s4 + $0x1d8] sm:$0xff]  ;;  %v1151_v0 = vld [vmem:[%s5428_s4 + $0x280] sm:$0xff]  ;;  %v1152_v1 = vld [vmem:[%s5428_s4 + $0x288] sm:$0xff]  ;;  %p4229_p0 = scmp.ne.s32.totalorder %s2995_s2, %s4228_s28  ;;  %p4234_p2 = scmp.lt.s32.totalorder %s4228_s28, %s4228_s28 }
 0x50d   :  { %v419_v8 = vadd.f32 %v3025_v6, %v414_v7  ;;  %v810_v6 = vld [vmem:[%s5428_s4 + $0x1e0] sm:$0xff]  ;;  %p4235_p3 = por %p4234_p2, %p4233_p1 }
 0x50e   :  { %v999_v7 = vld [vmem:[%s5428_s4 + $0x220] sm:$0xff] }
 0x50f   :  { %3430 = vmatmul.mubr.msk.f32.vlgmr.msra.gmra.mrb[4].mxu1 %vm319_vm3, %v419_v8  ;;  %3487 = vmatmul.mubr.msk.f32.vlgmr.msra.gmra.mrb[6].mxu0 %vm319_vm3, %v419_v8  ;;  %v3967_v8 = vpack.c.bf16 %v810_v6, %v809_v5  ;;  %p4236_p4 = pnand %p4235_p3, %p4229_p0 }
 0x510   :  { %3467 = vmatprep.mubr.msk.f32.mxu1 %vm4277_vm0, %v4278_v9  ;;  %3510 = vmatprep.mubr.msk.f32.mxu0 %vm4277_vm0, %v4278_v9 }
 0x511   :  { %3509 = vmatpush3.msra.mxu0 %v806_v60 }
 0x512   :  { %3975 = vmatprep.subr.bf16.mxu0 %v4276_v3 }
 0x513   :  { %3511 = vmatmul.mubr.msk.f32.vlgmr.msra.gmra.mrb[8].mxu0 %vm888_vm7, %v4637_v2 }
 0x514   :  { %3977 = vmatpush3.bf16.msra.mxu0 %v3976_v4  ;;  %3529 = vmatprep.mubr.msk.f32.mxu0 %vm4277_vm0, %v4278_v9  ;;  %v3997_v4 = vpack.c.bf16 %v1152_v1, %v1151_v0  ;;  %v1461_v1 = vld [vmem:[%s5428_s4 + $0x348] sm:$0xff] }
 0x515   :  { %3978 = vmatprep.subr.bf16.mxu0 %v4276_v3 }
 0x5e2   :  { %v505_v10 = vpop.f32.mrb[4].mxu1  ;;  %v768_v12 = vpop.f32.mrb[6].mxu0 }
 0x5e3   :  { %v576_v13 = vadd.f32 %v4498_v27, %v505_v10  ;;  %v3431_v14 = vpop.f32.mrb[5].mxu1  ;;  %v3488_v15 = vpop.f32.mrb[7].mxu0  ;;  %v622_v27 = vld [vmem:[%s5428_s4 + $0x188] sm:$0xff] }
 0x5e4   :  { %v3940_v28 = vpack.c.bf16 %v622_v27, %v621_v26  ;;  %v1000_v10 = vld [vmem:[%s5428_s4 + $0x228] sm:$0xff]  ;;  %v1001_v14 = vld [vmem:[%s5428_s4 + $0x230] sm:$0xff] }
 0x5e5   :  { %v586_v16 = vadd.f32 %v3028_v11, %v576_v13  ;;  %v3979_v11 = vpack.c.bf16 %v1000_v10, %v999_v7  ;;  %v812_v13 = vld [vmem:[%s5428_s4 + $0x1f0] sm:$0xff]  ;;  %v3039_v10 = vld [vmem:[%s5428_s4 + $0x6ab] ss:$0 sm:$0xff] }
 0x5e6   :  { %3941 = vmatpush3.bf16.msra.mxu1 %v3940_v28  ;;  %v958_v35 = vpop.f32.mrb[8].mxu0 }
 0x5e7   :  { %vm587_vm5 = vcmp.ge.f32.partialorder %v586_v16, 0.0  ;;  %v588_v17 = vmul.f32 0.01, %v586_v16  ;;  %3942 = vmatprep.subr.bf16.mxu1 %v4276_v3  ;;  %3980 = vmatpush3.bf16.msra.mxu0 %v3979_v11  ;;  %v3512_v36 = vpop.f32.mrb[9].mxu0 }
 0x5e8   :  { %3981 = vmatprep.subr.bf16.mxu0 %v4276_v3 }
 0x5e9   :  { %v589_v18 = vsel %vm587_vm5, %v586_v16, %v588_v17  ;;  %v1002_v16 = vld [vmem:[%s5428_s4 + $0x238] sm:$0xff] }
 0x5ea   :  { %v590_v19 = vsel %vm319_vm3, %v589_v18, 0.0  ;;  %3944 = vmatpush3.bf16.msra.mxu1 %v3943_v31  ;;  %v3982_v17 = vpack.c.bf16 %v1002_v16, %v1001_v14  ;;  %v3035_v31 = vld [vmem:[%s5428_s4 + $0x6a9] ss:$0 sm:$0xff]  ;;  %v3040_v14 = vld [vmem:[%s5428_s4 + $0x6ac] ss:$0 sm:$0xff] }
 0x5eb   :  { %591 = vadd.xlane.f32.xlu0 %v590_v19  ;;  %3945 = vmatprep.subr.bf16.mxu1 %v4276_v3  ;;  %v814_v19 = vld [vmem:[%s5428_s4 + $0x200] sm:$0xff] }
 0x5ec   :  { %3983 = vmatpush3.bf16.msra.mxu0 %v3982_v17 }
 0x5ed   :  { %3984 = vmatprep.subr.bf16.mxu0 %v4276_v3 }
 0x5ee   :  { %3947 = vmatpush3.bf16.msra.mxu1 %v3946_v34  ;;  %v996_v34 = vld [vmem:[%s5428_s4 + $0x208] sm:$0xff] }
 0x5ef   :  { %3948 = vmatprep.subr.bf16.mxu1 %v4276_v3 }
 0x5f2   :  { %3950 = vmatpush3.bf16.msra.mxu1 %v3949_v37 }
 0x5f3   :  { %3963 = vmatprep.subr.bf16.mxu1 %v4276_v3 }
 0x678   :  { %v592_v20 = vpop.xlane.xlu0 %591 }
 0x679   :  { %v593_v21 = vmul.f32 0.015625, %v592_v20  ;;  %v1003_v20 = vld [vmem:[%s5428_s4 + $0x240] sm:$0xff] }
 0x67b   :  { %v594_v22 = vsub.f32 %v589_v18, %v593_v21  ;;  %v813_v18 = vld [vmem:[%s5428_s4 + $0x1f8] sm:$0xff] }
 0x67c   :  { %v3973_v21 = vpack.c.bf16 %v814_v19, %v813_v18  ;;  %v1263_v18 = vld [vmem:[%s5428_s4 + $0x2a0] sm:$0xff]  ;;  %v1264_v19 = vld [vmem:[%s5428_s4 + $0x2a8] sm:$0xff] }
 0x67d   :  { %v595_v23 = vmul.f32 %v594_v22, %v594_v22 }
 0x67f   :  { %v596_v25 = vsel %vm319_vm3, %v595_v23, 0.0 }
 0x680   :  { %597 = vadd.xlane.f32.xlu1 %v596_v25 }
 0x70d   :  { %v598_v38 = vpop.xlane.xlu1 %597 }
 0x70e   :  { %v599_v39 = vmul.f32 0.015625, %v598_v38  ;;  %v3038_v38 = vld [vmem:[%s5428_s4 + $0x6aa] ss:$0 sm:$0xff] }
 0x710   :  { %v600_v40 = vadd.f32 1e-05, %v599_v39 }
 0x712   :  { %4202 = vrsqrt.f32 %v600_v40 }
 0x71c   :  { %v4203_v41 = vpop.eup %4202 }
 0x71d   :  { %v602_v43 = vmul.f32 %v4203_v41, %v594_v22  ;;  %v1004_v22 = vld [vmem:[%s5428_s4 + $0x248] sm:$0xff] }
 0x71e   :  { %v3985_v23 = vpack.c.bf16 %v1004_v22, %v1003_v20  ;;  %v4015_v20 = vpack.c.bf16 %v1264_v19, %v1263_v18  ;;  %v1266_v22 = vld [vmem:[%s5428_s4 + $0x2b8] sm:$0xff] }
 0x71f   :  { %v607_v45 = vmul.f32 %v3029_v42, %v602_v43 }
 0x720   :  { %3986 = vmatpush3.bf16.msra.mxu0 %v3985_v23 }
 0x721   :  { %v612_v46 = vadd.f32 %v3030_v44, %v607_v45  ;;  %3999 = vmatprep.subr.bf16.mxu0 %v4276_v3 }
 0x723   :  { %3468 = vmatmul.mubr.msk.f32.vlgmr.msra.gmra.mrb[6].mxu1 %vm319_vm3, %v612_v46 }
 0x724   :  { %3505 = vmatprep.mubr.msk.f32.mxu1 %vm4277_vm0, %v4278_v9  ;;  %3965 = vmatpush3.bf16.msra.mxu1 %v3964_v63  ;;  %v3994_v63 = vpack.c.bf16 %v1150_v62, %v1149_v61  ;;  %v1275_v61 = vld [vmem:[%s5428_s4 + $0x300] sm:$0xff]  ;;  %v1276_v62 = vld [vmem:[%s5428_s4 + $0x308] sm:$0xff] }
 0x725   :  { %3966 = vmatprep.subr.bf16.mxu1 %v4276_v3  ;;  %v4009_v0 = vpack.c.bf16 %v1276_v62, %v1275_v61  ;;  %v1658_v61 = vld [vmem:[%s5428_s4 + $0x3c0] sm:$0xff]  ;;  %v1659_v62 = vld [vmem:[%s5428_s4 + $0x3c8] sm:$0xff] }
 0x728   :  { %3968 = vmatpush3.bf16.msra.mxu1 %v3967_v8 }
 0x729   :  { %3969 = vmatprep.subr.bf16.mxu1 %v4276_v3 }
 0x7f6   :  { %v698_v47 = vpop.f32.mrb[6].mxu1 }
 0x7f7   :  { %v769_v49 = vadd.f32 %v768_v12, %v698_v47  ;;  %v3469_v50 = vpop.f32.mrb[7].mxu1  ;;  %v811_v12 = vld [vmem:[%s5428_s4 + $0x1e8] sm:$0xff] }
 0x7f8   :  { %v3970_v15 = vpack.c.bf16 %v812_v13, %v811_v12  ;;  %v1261_v12 = vld [vmem:[%s5428_s4 + $0x290] sm:$0xff]  ;;  %v1262_v13 = vld [vmem:[%s5428_s4 + $0x298] sm:$0xff] }
 0x7f9   :  { %v779_v51 = vadd.f32 %v3033_v48, %v769_v49  ;;  %v4012_v16 = vpack.c.bf16 %v1262_v13, %v1261_v12  ;;  %v3046_v12 = vld [vmem:[%s5428_s4 + $0x6af] ss:$0 sm:$0xff] }
 0x7fa   :  { %3971 = vmatpush3.bf16.msra.mxu1 %v3970_v15 }
 0x7fb   :  { %vm780_vm6 = vcmp.ge.f32.partialorder %v779_v51, 0.0  ;;  %v781_v52 = vmul.f32 0.01, %v779_v51  ;;  %3972 = vmatprep.subr.bf16.mxu1 %v4276_v3 }
 0x7fd   :  { %v782_v53 = vsel %vm780_vm6, %v779_v51, %v781_v52 }
 0x7fe   :  { %v783_v54 = vsel %vm319_vm3, %v782_v53, 0.0  ;;  %3974 = vmatpush3.bf16.msra.mxu1 %v3973_v21  ;;  %v1265_v21 = vld [vmem:[%s5428_s4 + $0x2b0] sm:$0xff] }
 0x7ff   :  { %784 = vadd.xlane.f32.xlu0 %v783_v54  ;;  %3532 = vmatprep.subr.mxu1 %v4278_v9  ;;  %v4018_v23 = vpack.c.bf16 %v1266_v22, %v1265_v21 }
 0x88c   :  { %v785_v55 = vpop.xlane.xlu0 %784 }
 0x88d   :  { %v786_v56 = vmul.f32 0.015625, %v785_v55  ;;  %v1145_v55 = vld [vmem:[%s5428_s4 + $0x250] sm:$0xff] }
 0x88f   :  { %v787_v57 = vsub.f32 %v782_v53, %v786_v56  ;;  %v1146_v56 = vld [vmem:[%s5428_s4 + $0x258] sm:$0xff] }
 0x891   :  { %v788_v58 = vmul.f32 %v787_v57, %v787_v57 }
 0x893   :  { %v789_v59 = vsel %vm319_vm3, %v788_v58, 0.0  ;;  %v1147_v58 = vld [vmem:[%s5428_s4 + $0x260] sm:$0xff] }
 0x894   :  { %790 = vadd.xlane.f32.xlu1 %v789_v59  ;;  %v1148_v59 = vld [vmem:[%s5428_s4 + $0x268] sm:$0xff] }
 0x895   :  { %v3991_v60 = vpack.c.bf16 %v1148_v59, %v1147_v58  ;;  %v1459_v59 = vld [vmem:[%s5428_s4 + $0x338] sm:$0xff] }
 0x921   :  { %v791_v25 = vpop.xlane.xlu1 %790 }
 0x922   :  { %v792_v26 = vmul.f32 0.015625, %v791_v25  ;;  %v1267_v25 = vld [vmem:[%s5428_s4 + $0x2c0] sm:$0xff] }
 0x924   :  { %v793_v27 = vadd.f32 1e-05, %v792_v26  ;;  %v1268_v26 = vld [vmem:[%s5428_s4 + $0x2c8] sm:$0xff] }
 0x926   :  { %4204 = vrsqrt.f32 %v793_v27  ;;  %v4021_v27 = vpack.c.bf16 %v1268_v26, %v1267_v25 }
 0x930   :  { %v4205_v28 = vpop.eup %4204 }
 0x931   :  { %v795_v30 = vmul.f32 %v4205_v28, %v787_v57  ;;  %v3988_v57 = vpack.c.bf16 %v1146_v56, %v1145_v55  ;;  %v1273_v55 = vld [vmem:[%s5428_s4 + $0x2f0] sm:$0xff]  ;;  %v1274_v56 = vld [vmem:[%s5428_s4 + $0x2f8] sm:$0xff] }
 0x932   :  { %v4006_v58 = vpack.c.bf16 %v1274_v56, %v1273_v55  ;;  %v1654_v55 = vld [vmem:[%s5428_s4 + $0x3a0] sm:$0xff]  ;;  %v1655_v56 = vld [vmem:[%s5428_s4 + $0x3a8] sm:$0xff] }
 0x933   :  { %v800_v32 = vmul.f32 %v3034_v29, %v795_v30  ;;  %v3044_v29 = vld [vmem:[%s5428_s4 + $0x6ad] ss:$0 sm:$0xff] }
 0x935   :  { %v805_v33 = vadd.f32 %v3035_v31, %v800_v32 }
 0x937   :  { %3506 = vmatmul.mubr.msk.f32.vlgmr.msra.gmra.mrb[8].mxu1 %vm319_vm3, %v805_v33  ;;  %3530 = vmatmul.mubr.msk.f32.vlgmr.msra.gmra.mrb[10].mxu0 %vm319_vm3, %v805_v33 }
 0x938   :  { %3533 = vmatpush3.msra.mxu1 %v996_v34  ;;  %3534 = vmatprep.mubr.msk.f32.mxu1 %vm4277_vm0, %v4278_v9 }
 0x939   :  { %3987 = vmatprep.subr.bf16.mxu1 %v4276_v3  ;;  %3572 = vmatprep.mubr.msk.f32.mxu0 %vm4277_vm0, %v4278_v9 }
 0x93b   :  { %3535 = vmatmul.mubr.msk.f32.vlgmr.msra.gmra.mrb[10].mxu1 %vm888_vm7, %v4637_v2 }
 0x93c   :  { %3553 = vmatprep.mubr.msk.f32.mxu1 %vm4277_vm0, %v4278_v9  ;;  %3989 = vmatpush3.bf16.msra.mxu1 %v3988_v57  ;;  %v1458_v57 = vld [vmem:[%s5428_s4 + $0x330] sm:$0xff] }
 0x93d   :  { %3990 = vmatprep.subr.bf16.mxu1 %v4276_v3 }
 0x940   :  { %3992 = vmatpush3.bf16.msra.mxu1 %v3991_v60  ;;  %v4042_v60 = vpack.c.bf16 %v1459_v59, %v1458_v57  ;;  %v4051_v57 = vpack.c.bf16 %v1655_v56, %v1654_v55  ;;  %v1657_v59 = vld [vmem:[%s5428_s4 + $0x3b8] sm:$0xff] }
 0x941   :  { %3993 = vmatprep.subr.bf16.mxu1 %v4276_v3 }
 0x944   :  { %3995 = vmatpush3.bf16.msra.mxu1 %v3994_v63  ;;  %v1460_v63 = vld [vmem:[%s5428_s4 + $0x340] sm:$0xff] }
 0x945   :  { %3996 = vmatprep.subr.bf16.mxu1 %v4276_v3 }
 0x948   :  { %3998 = vmatpush3.bf16.msra.mxu1 %v3997_v4  ;;  %v4045_v4 = vpack.c.bf16 %v1461_v1, %v1460_v63  ;;  %v4057_v63 = vpack.c.bf16 %v1659_v62, %v1658_v61  ;;  %v1764_v1 = vld [vmem:[%s5428_s4 + $0x3d8] sm:$0xff] }
 0x949   :  { %4011 = vmatprep.subr.bf16.mxu1 %v4276_v3  ;;  %v3060_v62 = vld [vmem:[%s5428_s4 + $0x6b8] ss:$0 sm:$0xff] }
 0xa0a   :  { %v884_v37 = vpop.f32.mrb[8].mxu1  ;;  %v1071_v39 = vpop.f32.mrb[10].mxu0 }
 0xa0b   :  { %v959_v40 = vadd.f32 %v958_v35, %v884_v37  ;;  %v3507_v41 = vpop.f32.mrb[9].mxu1  ;;  %v3531_v42 = vpop.f32.mrb[11].mxu0 }
 0xa0d   :  { %v969_v43 = vadd.f32 %v3038_v38, %v959_v40 }
 0xa0e   :  { %v1141_v44 = vpop.f32.mrb[10].mxu1 }
 0xa0f   :  { %v4710_v45 = vadd.f32 %v1141_v44, %v1071_v39  ;;  %vm970_vm8 = vcmp.ge.f32.partialorder %v969_v43, 0.0  ;;  %v971_v46 = vmul.f32 0.01, %v969_v43  ;;  %v3536_v47 = vpop.f32.mrb[11].mxu1  ;;  %v1270_v44 = vld [vmem:[%s5428_s4 + $0x2d8] sm:$0xff] }
 0xa10   :  { %v1455_v47 = vld [vmem:[%s5428_s4 + $0x318] sm:$0xff] }
 0xa11   :  { %v972_v48 = vsel %vm970_vm8, %v969_v43, %v971_v46  ;;  %v1269_v43 = vld [vmem:[%s5428_s4 + $0x2d0] sm:$0xff] }
 0xa12   :  { %v973_v49 = vsel %vm319_vm3, %v972_v48, 0.0  ;;  %v4000_v46 = vpack.c.bf16 %v1270_v44, %v1269_v43 }
 0xa13   :  { %974 = vadd.xlane.f32.xlu0 %v973_v49  ;;  %v1271_v49 = vld [vmem:[%s5428_s4 + $0x2e0] sm:$0xff] }
 0xa14   :  { %4001 = vmatpush3.bf16.msra.mxu0 %v4000_v46 }
 0xa15   :  { %4002 = vmatprep.subr.bf16.mxu0 %v4276_v3 }
 0xaa0   :  { %v975_v50 = vpop.xlane.xlu0 %974 }
 0xaa1   :  { %v976_v51 = vmul.f32 0.015625, %v975_v50  ;;  %v1272_v50 = vld [vmem:[%s5428_s4 + $0x2e8] sm:$0xff] }
 0xaa3   :  { %v977_v52 = vsub.f32 %v972_v48, %v976_v51  ;;  %v1456_v51 = vld [vmem:[%s5428_s4 + $0x320] sm:$0xff] }
 0xaa5   :  { %v978_v53 = vmul.f32 %v977_v52, %v977_v52 }
 0xaa7   :  { %v979_v54 = vsel %vm319_vm3, %v978_v53, 0.0  ;;  %v1457_v53 = vld [vmem:[%s5428_s4 + $0x328] sm:$0xff] }
 0xaa8   :  { %980 = vadd.xlane.f32.xlu1 %v979_v54  ;;  %v4039_v54 = vpack.c.bf16 %v1457_v53, %v1456_v51  ;;  %v3051_v51 = vld [vmem:[%s5428_s4 + $0x6b2] ss:$0 sm:$0xff] }
 0xb35   :  { %v981_v5 = vpop.xlane.xlu1 %980 }
 0xb36   :  { %v982_v6 = vmul.f32 0.015625, %v981_v5 }
 0xb38   :  { %v983_v7 = vadd.f32 1e-05, %v982_v6 }
 0xb3a   :  { %4206 = vrsqrt.f32 %v983_v7 }
 0xb44   :  { %v4207_v8 = vpop.eup %4206 }
 0xb45   :  { %v985_v11 = vmul.f32 %v4207_v8, %v977_v52  ;;  %v4003_v52 = vpack.c.bf16 %v1272_v50, %v1271_v49  ;;  %v1652_v49 = vld [vmem:[%s5428_s4 + $0x390] sm:$0xff]  ;;  %v1653_v50 = vld [vmem:[%s5428_s4 + $0x398] sm:$0xff] }
 0xb46   :  { %v4048_v53 = vpack.c.bf16 %v1653_v50, %v1652_v49  ;;  %v1777_v50 = vld [vmem:[%s5428_s4 + $0x440] sm:$0xff] }
 0xb47   :  { %v990_v15 = vmul.f32 %v3039_v10, %v985_v11  ;;  %4004 = vmatpush3.bf16.msra.mxu0 %v4003_v52  ;;  %v3045_v10 = vld [vmem:[%s5428_s4 + $0x6ae] ss:$0 sm:$0xff] }
 0xb48   :  { %4005 = vmatprep.subr.bf16.mxu0 %v4276_v3 }
 0xb49   :  { %v995_v17 = vadd.f32 %v3040_v14, %v990_v15 }
 0xb4b   :  { %3554 = vmatmul.mubr.msk.f32.vlgmr.msra.gmra.mrb[12].mxu1 %vm319_vm3, %v995_v17  ;;  %4007 = vmatpush3.bf16.msra.mxu0 %v4006_v58  ;;  %v1656_v58 = vld [vmem:[%s5428_s4 + $0x3b0] sm:$0xff] }
 0xb4c   :  { %4013 = vmatpush3.bf16.msra.mxu1 %v4012_v16  ;;  %3591 = vmatprep.mubr.msk.f32.mxu1 %vm4277_vm0, %v4278_v9  ;;  %v3049_v16 = vld [vmem:[%s5428_s4 + $0x6b0] ss:$0 sm:$0xff] }
 0xb4d   :  { %4014 = vmatprep.subr.bf16.mxu1 %v4276_v3  ;;  %4008 = vmatprep.subr.bf16.mxu0 %v4276_v3 }
 0xb4f   :  { %4010 = vmatpush3.bf16.msra.mxu0 %v4009_v0  ;;  %v1763_v0 = vld [vmem:[%s5428_s4 + $0x3d0] sm:$0xff] }
 0xb50   :  { %4016 = vmatpush3.bf16.msra.mxu1 %v4015_v20  ;;  %4023 = vmatprep.subr.bf16.mxu0 %v4276_v3 }
 0xb51   :  { %4017 = vmatprep.subr.bf16.mxu1 %v4276_v3 }
 0xb54   :  { %4019 = vmatpush3.bf16.msra.mxu1 %v4018_v23 }
 0xb55   :  { %4020 = vmatprep.subr.bf16.mxu1 %v4276_v3 }
 0xb58   :  { %4022 = vmatpush3.bf16.msra.mxu1 %v4021_v27 }
 0xb59   :  { %4035 = vmatprep.subr.bf16.mxu1 %v4276_v3 }
 0xb5b   :  { %3592 = vmatmul.mubr.msk.f32.vlgmr.msra.gmra.mrb[14].mxu1 %vm319_vm3, %v995_v17 }
 0xb5c   :  { %3629 = vmatprep.mubr.msk.f32.mxu1 %vm4277_vm0, %v4278_v9 }
 0xc1e   :  { %v1222_v28 = vpop.f32.mrb[12].mxu1 }
 0xc1f   :  { %v1226_v30 = vadd.f32 %v1222_v28, %v4710_v45  ;;  %v3555_v31 = vpop.f32.mrb[13].mxu1  ;;  %v1454_v45 = vld [vmem:[%s5428_s4 + $0x310] sm:$0xff] }
 0xc20   :  { %v4036_v48 = vpack.c.bf16 %v1455_v47, %v1454_v45  ;;  %v1462_v31 = vld [vmem:[%s5428_s4 + $0x350] sm:$0xff] }
 0xc21   :  { %v1234_v32 = vadd.f32 %v3044_v29, %v1226_v30  ;;  %v3050_v47 = vld [vmem:[%s5428_s4 + $0x6b1] ss:$0 sm:$0xff] }
 0xc22   :  { %4037 = vmatpush3.bf16.msra.mxu1 %v4036_v48 }
 0xc23   :  { %vm1235_vm9 = vcmp.ge.f32.partialorder %v1234_v32, 0.0  ;;  %v1236_v33 = vmul.f32 0.01, %v1234_v32  ;;  %4038 = vmatprep.subr.bf16.mxu1 %v4276_v3 }
 0xc25   :  { %v1237_v34 = vsel %vm1235_vm9, %v1234_v32, %v1236_v33  ;;  %v1463_v32 = vld [vmem:[%s5428_s4 + $0x358] sm:$0xff] }
 0xc26   :  { %v1238_v35 = vsel %vm319_vm3, %v1237_v34, 0.0  ;;  %4040 = vmatpush3.bf16.msra.mxu1 %v4039_v54  ;;  %v4024_v33 = vpack.c.bf16 %v1463_v32, %v1462_v31  ;;  %v1771_v32 = vld [vmem:[%s5428_s4 + $0x410] sm:$0xff] }
 0xc27   :  { %1239 = vadd.xlane.f32.xlu0 %v1238_v35  ;;  %4041 = vmatprep.subr.bf16.mxu1 %v4276_v3  ;;  %v1465_v35 = vld [vmem:[%s5428_s4 + $0x368] sm:$0xff] }
 0xc2a   :  { %4043 = vmatpush3.bf16.msra.mxu1 %v4042_v60  ;;  %v4054_v60 = vpack.c.bf16 %v1657_v59, %v1656_v58 }
 0xc2b   :  { %4044 = vmatprep.subr.bf16.mxu1 %v4276_v3 }
 0xc2e   :  { %v4787_v36 = vpop.f32.mrb[14].mxu1  ;;  %4046 = vmatpush3.bf16.msra.mxu1 %v4045_v4  ;;  %v4072_v4 = vpack.c.bf16 %v1764_v1, %v1763_v0 }
 0xc2f   :  { %v3593_v37 = vpop.f32.mrb[15].mxu1  ;;  %4059 = vmatprep.subr.bf16.mxu1 %v4276_v3 }
 0xc30   :  { %v1466_v37 = vld [vmem:[%s5428_s4 + $0x370] sm:$0xff] }
 0xcb4   :  { %v1240_v38 = vpop.xlane.xlu0 %1239 }
 0xcb5   :  { %v1241_v39 = vmul.f32 0.015625, %v1240_v38  ;;  %v1467_v38 = vld [vmem:[%s5428_s4 + $0x378] sm:$0xff] }
 0xcb7   :  { %v1242_v40 = vsub.f32 %v1237_v34, %v1241_v39  ;;  %v1464_v34 = vld [vmem:[%s5428_s4 + $0x360] sm:$0xff]  ;;  %v4030_v39 = vpack.c.bf16 %v1467_v38, %v1466_v37 }
 0xcb8   :  { %v1773_v38 = vld [vmem:[%s5428_s4 + $0x420] sm:$0xff] }
 0xcb9   :  { %v1243_v41 = vmul.f32 %v1242_v40, %v1242_v40 }
 0xcbb   :  { %v1244_v42 = vsel %vm319_vm3, %v1243_v41, 0.0  ;;  %v1469_v41 = vld [vmem:[%s5428_s4 + $0x388] sm:$0xff] }
 0xcbc   :  { %1245 = vadd.xlane.f32.xlu1 %v1244_v42 }
 0xd49   :  { %v1246_v5 = vpop.xlane.xlu1 %1245 }
 0xd4a   :  { %v1247_v6 = vmul.f32 0.015625, %v1246_v5  ;;  %v1765_v5 = vld [vmem:[%s5428_s4 + $0x3e0] sm:$0xff] }
 0xd4c   :  { %v1248_v7 = vadd.f32 1e-05, %v1247_v6  ;;  %v1766_v6 = vld [vmem:[%s5428_s4 + $0x3e8] sm:$0xff] }
 0xd4e   :  { %4208 = vrsqrt.f32 %v1248_v7  ;;  %v4075_v7 = vpack.c.bf16 %v1766_v6, %v1765_v5 }
 0xd58   :  { %v4209_v8 = vpop.eup %4208 }
 0xd59   :  { %v1250_v11 = vmul.f32 %v4209_v8, %v1242_v40  ;;  %v1468_v40 = vld [vmem:[%s5428_s4 + $0x380] sm:$0xff]  ;;  %v1767_v8 = vld [vmem:[%s5428_s4 + $0x3f0] sm:$0xff] }
 0xd5a   :  { %v4033_v42 = vpack.c.bf16 %v1469_v41, %v1468_v40  ;;  %v1958_v40 = vld [vmem:[%s5428_s4 + $0x460] sm:$0xff] }
 0xd5b   :  { %v1255_v13 = vmul.f32 %v3045_v10, %v1250_v11  ;;  %v1768_v10 = vld [vmem:[%s5428_s4 + $0x3f8] sm:$0xff] }
 0xd5c   :  { %v4078_v11 = vpack.c.bf16 %v1768_v10, %v1767_v8 }
 0xd5d   :  { %v1260_v14 = vadd.f32 %v3046_v12, %v1255_v13  ;;  %v1769_v12 = vld [vmem:[%s5428_s4 + $0x400] sm:$0xff]  ;;  %v1770_v13 = vld [vmem:[%s5428_s4 + $0x408] sm:$0xff] }
 0xd5f   :  { %3573 = vmatmul.mubr.msk.f32.vlgmr.msra.gmra.mrb[12].mxu0 %vm319_vm3, %v1260_v14  ;;  %3630 = vmatmul.mubr.msk.f32.vlgmr.msra.gmra.mrb[16].mxu1 %vm319_vm3, %v1260_v14  ;;  %v4081_v14 = vpack.c.bf16 %v1770_v13, %v1769_v12 }
 0xd60   :  { %3610 = vmatprep.mubr.msk.f32.mxu0 %vm4277_vm0, %v4278_v9  ;;  %3667 = vmatprep.mubr.msk.f32.mxu1 %vm4277_vm0, %v4278_v9 }
 0xd61   :  { %4025 = vmatpush3.bf16.msra.mxu0 %v4024_v33  ;;  %v1772_v33 = vld [vmem:[%s5428_s4 + $0x418] sm:$0xff] }
 0xd62   :  { %4026 = vmatprep.subr.bf16.mxu0 %v4276_v3 }
 0xe32   :  { %v1346_v15 = vpop.f32.mrb[12].mxu0  ;;  %v4861_v17 = vpop.f32.mrb[16].mxu1 }
 0xe33   :  { %v1417_v18 = vadd.f32 %v4787_v36, %v1346_v15  ;;  %v3574_v19 = vpop.f32.mrb[13].mxu0  ;;  %v3631_v20 = vpop.f32.mrb[17].mxu1  ;;  %v4027_v36 = vpack.c.bf16 %v1465_v35, %v1464_v34  ;;  %v1956_v34 = vld [vmem:[%s5428_s4 + $0x450] sm:$0xff]  ;;  %v4060_v35 = vpack.c.bf16 %v1772_v33, %v1771_v32 }
 0xe34   :  { %v3057_v19 = vld [vmem:[%s5428_s4 + $0x6b6] ss:$0 sm:$0xff] }
 0xe35   :  { %v1427_v21 = vadd.f32 %v3049_v16, %v1417_v18  ;;  %4028 = vmatpush3.bf16.msra.mxu0 %v4027_v36  ;;  %v1957_v36 = vld [vmem:[%s5428_s4 + $0x458] sm:$0xff]  ;;  %4061 = vmatpush3.bf16.msra.mxu1 %v4060_v35 }
 0xe36   :  { %4029 = vmatprep.subr.bf16.mxu0 %v4276_v3  ;;  %v4096_v37 = vpack.c.bf16 %v1957_v36, %v1956_v34  ;;  %4062 = vmatprep.subr.bf16.mxu1 %v4276_v3  ;;  %v3064_v36 = vld [vmem:[%s5428_s4 + $0x6ba] ss:$0 sm:$0xff] }
 0xe37   :  { %vm1428_vm10 = vcmp.ge.f32.partialorder %v1427_v21, 0.0  ;;  %v1429_v22 = vmul.f32 0.01, %v1427_v21 }
 0xe39   :  { %v1430_v23 = vsel %vm1428_vm10, %v1427_v21, %v1429_v22  ;;  %4031 = vmatpush3.bf16.msra.mxu0 %v4030_v39  ;;  %v1774_v39 = vld [vmem:[%s5428_s4 + $0x428] sm:$0xff] }
 0xe3a   :  { %v1431_v25 = vsel %vm319_vm3, %v1430_v23, 0.0  ;;  %4032 = vmatprep.subr.bf16.mxu0 %v4276_v3  ;;  %v4063_v41 = vpack.c.bf16 %v1774_v39, %v1773_v38  ;;  %v3065_v38 = vld [vmem:[%s5428_s4 + $0x6bb] ss:$0 sm:$0xff] }
 0xe3b   :  { %1432 = vadd.xlane.f32.xlu0 %v1431_v25 }
 0xe3c   :  { %4064 = vmatpush3.bf16.msra.mxu1 %v4063_v41 }
 0xe3d   :  { %4034 = vmatpush3.bf16.msra.mxu0 %v4033_v42  ;;  %v1959_v42 = vld [vmem:[%s5428_s4 + $0x468] sm:$0xff]  ;;  %4065 = vmatprep.subr.bf16.mxu1 %v4276_v3 }
 0xe3e   :  { %4047 = vmatprep.subr.bf16.mxu0 %v4276_v3 }
 0xec8   :  { %v1433_v26 = vpop.xlane.xlu0 %1432 }
 0xec9   :  { %v1434_v27 = vmul.f32 0.015625, %v1433_v26 }
 0xecb   :  { %v1435_v28 = vsub.f32 %v1430_v23, %v1434_v27 }
 0xecd   :  { %v1436_v29 = vmul.f32 %v1435_v28, %v1435_v28 }
 0xecf   :  { %v1437_v30 = vsel %vm319_vm3, %v1436_v29, 0.0 }
 0xed0   :  { %1438 = vadd.xlane.f32.xlu1 %v1437_v30 }
 0xf5d   :  { %v1439_v43 = vpop.xlane.xlu1 %1438 }
 0xf5e   :  { %v1440_v44 = vmul.f32 0.015625, %v1439_v43  ;;  %v4099_v43 = vpack.c.bf16 %v1959_v42, %v1958_v40  ;;  %v3068_v42 = vld [vmem:[%s5428_s4 + $0x6bc] ss:$0 sm:$0xff] }
 0xf60   :  { %v1441_v45 = vadd.f32 1e-05, %v1440_v44  ;;  %v1775_v44 = vld [vmem:[%s5428_s4 + $0x430] sm:$0xff] }
 0xf62   :  { %4210 = vrsqrt.f32 %v1441_v45  ;;  %v1776_v45 = vld [vmem:[%s5428_s4 + $0x438] sm:$0xff] }
 0xf6c   :  { %v4211_v46 = vpop.eup %4210 }
 0xf6d   :  { %v1443_v48 = vmul.f32 %v4211_v46, %v1435_v28  ;;  %v1960_v46 = vld [vmem:[%s5428_s4 + $0x470] sm:$0xff] }
 0xf6f   :  { %v1448_v52 = vmul.f32 %v3050_v47, %v1443_v48  ;;  %v4066_v47 = vpack.c.bf16 %v1776_v45, %v1775_v44  ;;  %v1961_v48 = vld [vmem:[%s5428_s4 + $0x478] sm:$0xff] }
 0xf70   :  { %v4102_v49 = vpack.c.bf16 %v1961_v48, %v1960_v46 }
 0xf71   :  { %v1453_v54 = vadd.f32 %v3051_v51, %v1448_v52  ;;  %4067 = vmatpush3.bf16.msra.mxu1 %v4066_v47  ;;  %v1778_v51 = vld [vmem:[%s5428_s4 + $0x448] sm:$0xff]  ;;  %v1962_v52 = vld [vmem:[%s5428_s4 + $0x480] sm:$0xff] }
 0xf72   :  { %4068 = vmatprep.subr.bf16.mxu1 %v4276_v3 }
 0xf73   :  { %3611 = vmatmul.mubr.msk.f32.vlgmr.msra.gmra.mrb[14].mxu0 %vm319_vm3, %v1453_v54  ;;  %v1963_v54 = vld [vmem:[%s5428_s4 + $0x488] sm:$0xff] }
 0xf74   :  { %4049 = vmatpush3.bf16.msra.mxu0 %v4048_v53  ;;  %3648 = vmatprep.mubr.msk.f32.mxu0 %vm4277_vm0, %v4278_v9  ;;  %v4069_v53 = vpack.c.bf16 %v1778_v51, %v1777_v50  ;;  %v4105_v55 = vpack.c.bf16 %v1963_v54, %v1962_v52  ;;  %v2149_v54 = vld [vmem:[%s5428_s4 + $0x4d0] sm:$0xff] }
 0xf75   :  { %4050 = vmatprep.subr.bf16.mxu0 %v4276_v3 }
 0xf76   :  { %4070 = vmatpush3.bf16.msra.mxu1 %v4069_v53 }
 0xf77   :  { %4083 = vmatprep.subr.bf16.mxu1 %v4276_v3 }
 0xf78   :  { %4052 = vmatpush3.bf16.msra.mxu0 %v4051_v57 }
 0xf79   :  { %4053 = vmatprep.subr.bf16.mxu0 %v4276_v3 }
 0xf7c   :  { %4055 = vmatpush3.bf16.msra.mxu0 %v4054_v60  ;;  %v3059_v60 = vld [vmem:[%s5428_s4 + $0x6b7] ss:$0 sm:$0xff] }
 0xf7d   :  { %4056 = vmatprep.subr.bf16.mxu0 %v4276_v3 }
 0xf80   :  { %4058 = vmatpush3.bf16.msra.mxu0 %v4057_v63 }
 0xf81   :  { %4071 = vmatprep.subr.bf16.mxu0 %v4276_v3 }
 0xf83   :  { %3649 = vmatmul.mubr.msk.f32.vlgmr.msra.gmra.mrb[16].mxu0 %vm319_vm3, %v4485_v24 }
 0xf84   :  { %4073 = vmatpush3.bf16.msra.mxu0 %v4072_v4  ;;  %3686 = vmatprep.mubr.msk.f32.mxu0 %vm4277_vm0, %v4278_v9  ;;  %v3063_v4 = vld [vmem:[%s5428_s4 + $0x6b9] ss:$0 sm:$0xff] }
 0xf85   :  { %4074 = vmatprep.subr.bf16.mxu0 %v4276_v3 }
 0xf88   :  { %4076 = vmatpush3.bf16.msra.mxu0 %v4075_v7 }
 0xf89   :  { %4077 = vmatprep.subr.bf16.mxu0 %v4276_v3 }
 0xf8c   :  { %4079 = vmatpush3.bf16.msra.mxu0 %v4078_v11 }
 0xf8d   :  { %4080 = vmatprep.subr.bf16.mxu0 %v4276_v3 }
 0xf90   :  { %4082 = vmatpush3.bf16.msra.mxu0 %v4081_v14 }
 0xf91   :  { %4095 = vmatprep.subr.bf16.mxu0 %v4276_v3 }
 0xf93   :  { %3687 = vmatmul.mubr.msk.f32.vlgmr.msra.gmra.mrb[18].mxu0 %vm319_vm3, %v4485_v24 }
 0xf94   :  { %3724 = vmatprep.mubr.msk.f32.mxu0 %vm4277_vm0, %v4278_v9  ;;  %4097 = vmatpush3.bf16.msra.mxu0 %v4096_v37 }
 0xf95   :  { %4098 = vmatprep.subr.bf16.mxu0 %v4276_v3 }
 0xf98   :  { %4100 = vmatpush3.bf16.msra.mxu0 %v4099_v43 }
 0xf99   :  { %4101 = vmatprep.subr.bf16.mxu0 %v4276_v3 }
 0xf9c   :  { %4103 = vmatpush3.bf16.msra.mxu0 %v4102_v49 }
 0xf9d   :  { %4104 = vmatprep.subr.bf16.mxu0 %v4276_v3 }
 0xfa0   :  { %4106 = vmatpush3.bf16.msra.mxu0 %v4105_v55  ;;  %v2150_v55 = vld [vmem:[%s5428_s4 + $0x4d8] sm:$0xff] }
 0xfa1   :  { %3746 = vmatprep.subr.mxu0 %v4278_v9 }
0x1046   :  { %v1539_v15 = vpop.f32.mrb[14].mxu0 }
0x1047   :  { %v4968_v16 = vadd.f32 %v4861_v17, %v1539_v15  ;;  %v3612_v18 = vpop.f32.mrb[15].mxu0 }
0x1056   :  { %v1733_v20 = vpop.f32.mrb[16].mxu0 }
0x1057   :  { %v1734_v21 = vadd.f32 %v3057_v19, %v1733_v20  ;;  %v3650_v22 = vpop.f32.mrb[17].mxu0 }
0x1058   :  { %v1965_v22 = vld [vmem:[%s5428_s4 + $0x498] sm:$0xff] }
0x1059   :  { %v1738_v23 = vmul.f32 0.01, %v1734_v21  ;;  %vm1737_vm11 = vcmp.ge.f32.partialorder %v1734_v21, 0.0 }
0x105b   :  { %v1739_v25 = vsel %vm1737_vm11, %v1734_v21, %v1738_v23  ;;  %v1964_v21 = vld [vmem:[%s5428_s4 + $0x490] sm:$0xff] }
0x105c   :  { %v1740_v24 = vsel %vm319_vm3, %v1739_v25, 0.0  ;;  %v4084_v23 = vpack.c.bf16 %v1965_v22, %v1964_v21 }
0x105d   :  { %1741 = vadd.xlane.f32.xlu0 %v1740_v24  ;;  %v1967_v24 = vld [vmem:[%s5428_s4 + $0x4a8] sm:$0xff] }
0x1066   :  { %v4974_v26 = vpop.f32.mrb[18].mxu0 }
0x1067   :  { %v3688_v27 = vpop.f32.mrb[19].mxu0 }
0x1068   :  { %v1968_v27 = vld [vmem:[%s5428_s4 + $0x4b0] sm:$0xff] }
0x10ea   :  { %v1742_v28 = vpop.xlane.xlu0 %1741 }
0x10eb   :  { %v1743_v17 = vmul.f32 0.015625, %v1742_v28  ;;  %v1969_v28 = vld [vmem:[%s5428_s4 + $0x4b8] sm:$0xff] }
0x10ed   :  { %v1744_v29 = vsub.f32 %v1739_v25, %v1743_v17  ;;  %v1966_v25 = vld [vmem:[%s5428_s4 + $0x4a0] sm:$0xff]  ;;  %v4090_v17 = vpack.c.bf16 %v1969_v28, %v1968_v27 }
0x10ef   :  { %v1745_v30 = vmul.f32 %v1744_v29, %v1744_v29 }
0x10f1   :  { %v1746_v31 = vsel %vm319_vm3, %v1745_v30, 0.0  ;;  %v1971_v30 = vld [vmem:[%s5428_s4 + $0x4c8] sm:$0xff] }
0x10f2   :  { %1747 = vadd.xlane.f32.xlu1 %v1746_v31 }
0x117f   :  { %v1748_v56 = vpop.xlane.xlu1 %1747 }
0x1180   :  { %v1749_v57 = vmul.f32 0.015625, %v1748_v56  ;;  %v2151_v56 = vld [vmem:[%s5428_s4 + $0x4e0] sm:$0xff] }
0x1182   :  { %v1750_v58 = vadd.f32 1e-05, %v1749_v57  ;;  %v4108_v57 = vpack.c.bf16 %v2151_v56, %v2150_v55  ;;  %v2489_v55 = vld [vmem:[%s5428_s4 + $0x588] sm:$0xff] }
0x1184   :  { %4212 = vrsqrt.f32 %v1750_v58  ;;  %v2336_v58 = vld [vmem:[%s5428_s4 + $0x520] sm:$0xff] }
0x118e   :  { %v4213_v59 = vpop.eup %4212 }
0x118f   :  { %v1752_v61 = vmul.f32 %v4213_v59, %v1744_v29  ;;  %v1970_v29 = vld [vmem:[%s5428_s4 + $0x4c0] sm:$0xff]  ;;  %v2337_v59 = vld [vmem:[%s5428_s4 + $0x528] sm:$0xff] }
0x1190   :  { %v4093_v31 = vpack.c.bf16 %v1971_v30, %v1970_v29 }
0x1191   :  { %v1757_v63 = vmul.f32 %v3059_v60, %v1752_v61  ;;  %v4120_v60 = vpack.c.bf16 %v2337_v59, %v2336_v58  ;;  %v2152_v61 = vld [vmem:[%s5428_s4 + $0x4e8] sm:$0xff]  ;;  %v2491_v58 = vld [vmem:[%s5428_s4 + $0x598] sm:$0xff] }
0x1193   :  { %v1762_v0 = vadd.f32 %v3060_v62, %v1757_v63  ;;  %v2153_v62 = vld [vmem:[%s5428_s4 + $0x4f0] sm:$0xff] }
0x1194   :  { %v2338_v63 = vld [vmem:[%s5428_s4 + $0x530] sm:$0xff] }
0x1195   :  { %3668 = vmatmul.mubr.msk.f32.vlgmr.msra.gmra.mrb[18].mxu1 %vm319_vm3, %v1762_v0  ;;  %3725 = vmatmul.mubr.msk.f32.vlgmr.msra.gmra.mrb[20].mxu0 %vm319_vm3, %v1762_v0  ;;  %v4111_v0 = vpack.c.bf16 %v2153_v62, %v2152_v61 }
0x1196   :  { %3705 = vmatprep.mubr.msk.f32.mxu1 %vm4277_vm0, %v4278_v9  ;;  %3748 = vmatprep.mubr.msk.f32.mxu0 %vm4277_vm0, %v4278_v9 }
0x1197   :  { %4085 = vmatpush3.bf16.msra.mxu1 %v4084_v23  ;;  %3747 = vmatpush3.msra.mxu0 %v2149_v54  ;;  %v2488_v54 = vld [vmem:[%s5428_s4 + $0x580] sm:$0xff] }
0x1198   :  { %4086 = vmatprep.subr.bf16.mxu1 %v4276_v3  ;;  %4119 = vmatprep.subr.bf16.mxu0 %v4276_v3  ;;  %v4138_v56 = vpack.c.bf16 %v2489_v55, %v2488_v54  ;;  %v2615_v54 = vld [vmem:[%s5428_s4 + $0x618] sm:$0xff]  ;;  %v2799_v55 = vld [vmem:[%s5428_s4 + $0x650] sm:$0xff] }
0x1199   :  { %3749 = vmatmul.mubr.msk.f32.vlgmr.msra.gmra.mrb[22].mxu0 %vm888_vm7, %v4637_v2 }
0x119a   :  { %3767 = vmatprep.mubr.msk.f32.mxu0 %vm4277_vm0, %v4278_v9  ;;  %4121 = vmatpush3.bf16.msra.mxu0 %v4120_v60 }
0x119b   :  { %4122 = vmatprep.subr.bf16.mxu0 %v4276_v3 }
0x1268   :  { %v1848_v1 = vpop.f32.mrb[18].mxu1  ;;  %v2111_v5 = vpop.f32.mrb[20].mxu0 }
0x1269   :  { %v1919_v6 = vadd.f32 %v4974_v26, %v1848_v1  ;;  %v3669_v7 = vpop.f32.mrb[19].mxu1  ;;  %v3726_v8 = vpop.f32.mrb[21].mxu0  ;;  %v4087_v26 = vpack.c.bf16 %v1967_v24, %v1966_v25  ;;  %v2339_v1 = vld [vmem:[%s5428_s4 + $0x538] sm:$0xff] }
0x126a   :  { %v2340_v7 = vld [vmem:[%s5428_s4 + $0x540] sm:$0xff]  ;;  %v3069_v25 = vld [vmem:[%s5428_s4 + $0x6bd] ss:$0 sm:$0xff] }
0x126b   :  { %v1929_v10 = vadd.f32 %v3063_v4, %v1919_v6  ;;  %4088 = vmatpush3.bf16.msra.mxu1 %v4087_v26  ;;  %v4123_v4 = vpack.c.bf16 %v2339_v1, %v2338_v63  ;;  %v2155_v6 = vld [vmem:[%s5428_s4 + $0x500] sm:$0xff]  ;;  %v3070_v26 = vld [vmem:[%s5428_s4 + $0x6be] ss:$0 sm:$0xff] }
0x126c   :  { %4089 = vmatprep.subr.bf16.mxu1 %v4276_v3  ;;  %v2297_v29 = vpop.f32.mrb[22].mxu0 }
0x126d   :  { %vm1930_vm12 = vcmp.ge.f32.partialorder %v1929_v10, 0.0  ;;  %v1931_v11 = vmul.f32 0.01, %v1929_v10  ;;  %4124 = vmatpush3.bf16.msra.mxu0 %v4123_v4  ;;  %v3750_v30 = vpop.f32.mrb[23].mxu0  ;;  %v2600_v4 = vld [vmem:[%s5428_s4 + $0x5a0] sm:$0xff] }
0x126e   :  { %4125 = vmatprep.subr.bf16.mxu0 %v4276_v3 }
0x126f   :  { %v1932_v12 = vsel %vm1930_vm12, %v1929_v10, %v1931_v11  ;;  %4091 = vmatpush3.bf16.msra.mxu1 %v4090_v17  ;;  %v2341_v10 = vld [vmem:[%s5428_s4 + $0x548] sm:$0xff]  ;;  %v2335_v17 = vld [vmem:[%s5428_s4 + $0x518] sm:$0xff] }
0x1270   :  { %v1933_v13 = vsel %vm319_vm3, %v1932_v12, 0.0  ;;  %4092 = vmatprep.subr.bf16.mxu1 %v4276_v3  ;;  %v4126_v11 = vpack.c.bf16 %v2341_v10, %v2340_v7 }
0x1271   :  { %1934 = vadd.xlane.f32.xlu0 %v1933_v13  ;;  %v2157_v13 = vld [vmem:[%s5428_s4 + $0x510] sm:$0xff] }
0x1272   :  { %4127 = vmatpush3.bf16.msra.mxu0 %v4126_v11  ;;  %v2602_v11 = vld [vmem:[%s5428_s4 + $0x5b0] sm:$0xff] }
0x1273   :  { %4094 = vmatpush3.bf16.msra.mxu1 %v4093_v31  ;;  %4128 = vmatprep.subr.bf16.mxu0 %v4276_v3 }
0x1274   :  { %4107 = vmatprep.subr.bf16.mxu1 %v4276_v3 }
0x12fe   :  { %v1935_v14 = vpop.xlane.xlu0 %1934 }
0x12ff   :  { %v1936_v15 = vmul.f32 0.015625, %v1935_v14  ;;  %v2342_v14 = vld [vmem:[%s5428_s4 + $0x550] sm:$0xff] }
0x1301   :  { %v1937_v18 = vsub.f32 %v1932_v12, %v1936_v15  ;;  %v2156_v12 = vld [vmem:[%s5428_s4 + $0x508] sm:$0xff] }
0x1302   :  { %v4117_v15 = vpack.c.bf16 %v2157_v13, %v2156_v12  ;;  %v2603_v12 = vld [vmem:[%s5428_s4 + $0x5b8] sm:$0xff] }
0x1303   :  { %v1938_v19 = vmul.f32 %v1937_v18, %v1937_v18  ;;  %v4159_v13 = vpack.c.bf16 %v2603_v12, %v2602_v11 }
0x1305   :  { %v1939_v20 = vsel %vm319_vm3, %v1938_v19, 0.0 }
0x1306   :  { %1940 = vadd.xlane.f32.xlu1 %v1939_v20 }
0x1393   :  { %v1941_v32 = vpop.xlane.xlu1 %1940 }
0x1394   :  { %v1942_v33 = vmul.f32 0.015625, %v1941_v32  ;;  %v3073_v32 = vld [vmem:[%s5428_s4 + $0x6bf] ss:$0 sm:$0xff] }
0x1396   :  { %v1943_v34 = vadd.f32 1e-05, %v1942_v33 }
0x1398   :  { %4214 = vrsqrt.f32 %v1943_v34 }
0x13a2   :  { %v4215_v35 = vpop.eup %4214 }
0x13a3   :  { %v1945_v37 = vmul.f32 %v4215_v35, %v1937_v18  ;;  %v2343_v18 = vld [vmem:[%s5428_s4 + $0x558] sm:$0xff] }
0x13a4   :  { %v4129_v19 = vpack.c.bf16 %v2343_v18, %v2342_v14  ;;  %v2604_v14 = vld [vmem:[%s5428_s4 + $0x5c0] sm:$0xff] }
0x13a5   :  { %v1950_v39 = vmul.f32 %v3064_v36, %v1945_v37 }
0x13a6   :  { %4130 = vmatpush3.bf16.msra.mxu0 %v4129_v19  ;;  %v2606_v19 = vld [vmem:[%s5428_s4 + $0x5d0] sm:$0xff] }
0x13a7   :  { %v1955_v40 = vadd.f32 %v3065_v38, %v1950_v39  ;;  %4143 = vmatprep.subr.bf16.mxu0 %v4276_v3 }
0x13a9   :  { %3706 = vmatmul.mubr.msk.f32.vlgmr.msra.gmra.mrb[20].mxu1 %vm319_vm3, %v1955_v40 }
0x13aa   :  { %3743 = vmatprep.mubr.msk.f32.mxu1 %vm4277_vm0, %v4278_v9  ;;  %4109 = vmatpush3.bf16.msra.mxu1 %v4108_v57  ;;  %v2490_v57 = vld [vmem:[%s5428_s4 + $0x590] sm:$0xff] }
0x13ab   :  { %4110 = vmatprep.subr.bf16.mxu1 %v4276_v3  ;;  %v4141_v59 = vpack.c.bf16 %v2491_v58, %v2490_v57  ;;  %v2800_v57 = vld [vmem:[%s5428_s4 + $0x658] sm:$0xff] }
0x13ac   :  { %v4189_v58 = vpack.c.bf16 %v2800_v57, %v2799_v55  ;;  %v3055_v57 = vld [vmem:[%s5428_s4 + $0x6b4] ss:$0 sm:$0xff] }
0x13ae   :  { %4112 = vmatpush3.bf16.msra.mxu1 %v4111_v0  ;;  %v3074_v0 = vld [vmem:[%s5428_s4 + $0x6c0] ss:$0 sm:$0xff] }
0x13af   :  { %4113 = vmatprep.subr.bf16.mxu1 %v4276_v3 }
0x147c   :  { %v2041_v41 = vpop.f32.mrb[20].mxu1 }
0x147d   :  { %v2112_v43 = vadd.f32 %v2111_v5, %v2041_v41  ;;  %v3707_v44 = vpop.f32.mrb[21].mxu1  ;;  %v2154_v5 = vld [vmem:[%s5428_s4 + $0x4f8] sm:$0xff] }
0x147e   :  { %v4114_v8 = vpack.c.bf16 %v2155_v6, %v2154_v5  ;;  %v2601_v5 = vld [vmem:[%s5428_s4 + $0x5a8] sm:$0xff]  ;;  %v3075_v6 = vld [vmem:[%s5428_s4 + $0x6c1] ss:$0 sm:$0xff] }
0x147f   :  { %v2122_v45 = vadd.f32 %v3068_v42, %v2112_v43 }
0x1480   :  { %4115 = vmatpush3.bf16.msra.mxu1 %v4114_v8  ;;  %v4156_v8 = vpack.c.bf16 %v2601_v5, %v2600_v4 }
0x1481   :  { %vm2123_vm13 = vcmp.ge.f32.partialorder %v2122_v45, 0.0  ;;  %v2124_v46 = vmul.f32 0.01, %v2122_v45  ;;  %4116 = vmatprep.subr.bf16.mxu1 %v4276_v3 }
0x1483   :  { %v2125_v47 = vsel %vm2123_vm13, %v2122_v45, %v2124_v46 }
0x1484   :  { %v2126_v48 = vsel %vm319_vm3, %v2125_v47, 0.0  ;;  %4118 = vmatpush3.bf16.msra.mxu1 %v4117_v15  ;;  %v2605_v15 = vld [vmem:[%s5428_s4 + $0x5c8] sm:$0xff] }
0x1485   :  { %2127 = vadd.xlane.f32.xlu0 %v2126_v48  ;;  %3770 = vmatprep.subr.mxu1 %v4278_v9  ;;  %v2484_v48 = vld [vmem:[%s5428_s4 + $0x560] sm:$0xff]  ;;  %v4162_v18 = vpack.c.bf16 %v2605_v15, %v2604_v14 }
0x1512   :  { %v2128_v49 = vpop.xlane.xlu0 %2127 }
0x1513   :  { %v2129_v50 = vmul.f32 0.015625, %v2128_v49  ;;  %v2485_v49 = vld [vmem:[%s5428_s4 + $0x568] sm:$0xff] }
0x1515   :  { %v2130_v51 = vsub.f32 %v2125_v47, %v2129_v50  ;;  %v4132_v50 = vpack.c.bf16 %v2485_v49, %v2484_v48  ;;  %v2613_v48 = vld [vmem:[%s5428_s4 + $0x608] sm:$0xff]  ;;  %v2797_v49 = vld [vmem:[%s5428_s4 + $0x640] sm:$0xff] }
0x1517   :  { %v2131_v52 = vmul.f32 %v2130_v51, %v2130_v51 }
0x1519   :  { %v2132_v53 = vsel %vm319_vm3, %v2131_v52, 0.0  ;;  %v2487_v52 = vld [vmem:[%s5428_s4 + $0x578] sm:$0xff] }
0x151a   :  { %2133 = vadd.xlane.f32.xlu1 %v2132_v53 }
0x15a7   :  { %v2134_v20 = vpop.xlane.xlu1 %2133 }
0x15a8   :  { %v2135_v21 = vmul.f32 0.015625, %v2134_v20  ;;  %v2607_v20 = vld [vmem:[%s5428_s4 + $0x5d8] sm:$0xff] }
0x15aa   :  { %v2136_v22 = vadd.f32 1e-05, %v2135_v21  ;;  %v4165_v21 = vpack.c.bf16 %v2607_v20, %v2606_v19 }
0x15ac   :  { %4216 = vrsqrt.f32 %v2136_v22 }
0x15b6   :  { %v4217_v23 = vpop.eup %4216 }
0x15b7   :  { %v2138_v24 = vmul.f32 %v4217_v23, %v2130_v51  ;;  %v2486_v51 = vld [vmem:[%s5428_s4 + $0x570] sm:$0xff]  ;;  %v3079_v23 = vld [vmem:[%s5428_s4 + $0x6c2] ss:$0 sm:$0xff] }
0x15b8   :  { %v4135_v53 = vpack.c.bf16 %v2487_v52, %v2486_v51  ;;  %v2798_v51 = vld [vmem:[%s5428_s4 + $0x648] sm:$0xff] }
0x15b9   :  { %v2143_v27 = vmul.f32 %v3069_v25, %v2138_v24  ;;  %v4186_v52 = vpack.c.bf16 %v2798_v51, %v2797_v49 }
0x15bb   :  { %v2148_v28 = vadd.f32 %v3070_v26, %v2143_v27 }
0x15bd   :  { %3744 = vmatmul.mubr.msk.f32.vlgmr.msra.gmra.mrb[22].mxu1 %vm319_vm3, %v2148_v28  ;;  %3768 = vmatmul.mubr.msk.f32.vlgmr.msra.gmra.mrb[24].mxu0 %vm319_vm3, %v2148_v28 }
0x15be   :  { %3771 = vmatpush3.msra.mxu1 %v2335_v17  ;;  %3772 = vmatprep.mubr.msk.f32.mxu1 %vm4277_vm0, %v4278_v9 }
0x15bf   :  { %4131 = vmatprep.subr.bf16.mxu1 %v4276_v3  ;;  %3810 = vmatprep.mubr.msk.f32.mxu0 %vm4277_vm0, %v4278_v9 }
0x15c1   :  { %3773 = vmatmul.mubr.msk.f32.vlgmr.msra.gmra.mrb[24].mxu1 %vm888_vm7, %v4637_v2 }
0x15c2   :  { %3791 = vmatprep.mubr.msk.f32.mxu1 %vm4277_vm0, %v4278_v9  ;;  %4133 = vmatpush3.bf16.msra.mxu1 %v4132_v50 }
0x15c3   :  { %4134 = vmatprep.subr.bf16.mxu1 %v4276_v3 }
0x15c6   :  { %4136 = vmatpush3.bf16.msra.mxu1 %v4135_v53  ;;  %v2614_v53 = vld [vmem:[%s5428_s4 + $0x610] sm:$0xff] }
0x15c7   :  { %4137 = vmatprep.subr.bf16.mxu1 %v4276_v3 }
0x15ca   :  { %4139 = vmatpush3.bf16.msra.mxu1 %v4138_v56  ;;  %v4153_v56 = vpack.c.bf16 %v2615_v54, %v2614_v53 }
0x15cb   :  { %4140 = vmatprep.subr.bf16.mxu1 %v4276_v3 }
0x15ce   :  { %4142 = vmatpush3.bf16.msra.mxu1 %v4141_v59 }
0x15cf   :  { %4155 = vmatprep.subr.bf16.mxu1 %v4276_v3 }
0x1690   :  { %v2227_v31 = vpop.f32.mrb[22].mxu1  ;;  %v2410_v33 = vpop.f32.mrb[24].mxu0 }
0x1691   :  { %v2298_v34 = vadd.f32 %v2297_v29, %v2227_v31  ;;  %v3745_v35 = vpop.f32.mrb[23].mxu1  ;;  %v3769_v36 = vpop.f32.mrb[25].mxu0 }
0x1692   :  { %v2608_v36 = vld [vmem:[%s5428_s4 + $0x5e0] sm:$0xff] }
0x1693   :  { %v2308_v37 = vadd.f32 %v3073_v32, %v2298_v34 }
0x1694   :  { %v2480_v38 = vpop.f32.mrb[24].mxu1 }
0x1695   :  { %v5180_v39 = vadd.f32 %v2480_v38, %v2410_v33  ;;  %vm2309_vm14 = vcmp.ge.f32.partialorder %v2308_v37, 0.0  ;;  %v2310_v2 = vmul.f32 0.01, %v2308_v37  ;;  %v3774_v40 = vpop.f32.mrb[25].mxu1  ;;  %v2793_v38 = vld [vmem:[%s5428_s4 + $0x620] sm:$0xff] }
0x1697   :  { %v2311_v41 = vsel %vm2309_vm14, %v2308_v37, %v2310_v2  ;;  %v2609_v37 = vld [vmem:[%s5428_s4 + $0x5e8] sm:$0xff] }
0x1698   :  { %v2312_v42 = vsel %vm319_vm3, %v2311_v41, 0.0  ;;  %v2794_v2 = vld [vmem:[%s5428_s4 + $0x628] sm:$0xff] }
0x1699   :  { %2313 = vadd.xlane.f32.xlu0 %v2312_v42  ;;  %v4180_v40 = vpack.c.bf16 %v2794_v2, %v2793_v38  ;;  %v2611_v42 = vld [vmem:[%s5428_s4 + $0x5f8] sm:$0xff]  ;;  %v2805_v2 = vld [vmem:[%s5428_s4 + $0x680] sm:$0xff] }
0x169a   :  { %v2804_v38 = vld [vmem:[%s5428_s4 + $0x678] sm:$0xff] }
0x1726   :  { %v2314_v43 = vpop.xlane.xlu0 %2313 }
0x1727   :  { %v2315_v44 = vmul.f32 0.015625, %v2314_v43  ;;  %v2795_v43 = vld [vmem:[%s5428_s4 + $0x630] sm:$0xff] }
0x1729   :  { %v2316_v45 = vsub.f32 %v2311_v41, %v2315_v44  ;;  %v2610_v41 = vld [vmem:[%s5428_s4 + $0x5f0] sm:$0xff] }
0x172a   :  { %v4147_v44 = vpack.c.bf16 %v2611_v42, %v2610_v41  ;;  %v2807_v42 = vld [vmem:[%s5428_s4 + $0x690] sm:$0xff] }
0x172b   :  { %v2317_v46 = vmul.f32 %v2316_v45, %v2316_v45 }
0x172d   :  { %v2318_v47 = vsel %vm319_vm3, %v2317_v46, 0.0 }
0x172e   :  { %2319 = vadd.xlane.f32.xlu1 %v2318_v47  ;;  %v2612_v47 = vld [vmem:[%s5428_s4 + $0x600] sm:$0xff] }
0x172f   :  { %v4150_v50 = vpack.c.bf16 %v2613_v48, %v2612_v47 }
0x17bb   :  { %v2320_v60 = vpop.xlane.xlu1 %2319 }
0x17bc   :  { %v2321_v61 = vmul.f32 0.015625, %v2320_v60 }
0x17be   :  { %v2322_v62 = vadd.f32 1e-05, %v2321_v61 }
0x17c0   :  { %4218 = vrsqrt.f32 %v2322_v62 }
0x17ca   :  { %v4219_v63 = vpop.eup %4218 }
0x17cb   :  { %v2324_v1 = vmul.f32 %v4219_v63, %v2316_v45  ;;  %v2796_v45 = vld [vmem:[%s5428_s4 + $0x638] sm:$0xff]  ;;  %v3080_v63 = vld [vmem:[%s5428_s4 + $0x6c3] ss:$0 sm:$0xff] }
0x17cc   :  { %v4183_v46 = vpack.c.bf16 %v2796_v45, %v2795_v43  ;;  %v2808_v43 = vld [vmem:[%s5428_s4 + $0x698] sm:$0xff] }
0x17cd   :  { %v2329_v7 = vmul.f32 %v3074_v0, %v2324_v1  ;;  %v3081_v1 = vld [vmem:[%s5428_s4 + $0x6c4] ss:$0 sm:$0xff] }
0x17cf   :  { %v2334_v10 = vadd.f32 %v3075_v6, %v2329_v7  ;;  %v3054_v6 = vld [vmem:[%s5428_s4 + $0x6b3] ss:$0 sm:$0xff] }
0x17d0   :  { %v1620_v11 = vadd.f32 %v3054_v6, %v4968_v16 }
0x17d1   :  { %3792 = vmatmul.mubr.msk.f32.vlgmr.msra.gmra.mrb[26].mxu1 %vm319_vm3, %v2334_v10 }
0x17d2   :  { %4157 = vmatpush3.bf16.msra.mxu1 %v4156_v8  ;;  %3829 = vmatprep.mubr.msk.f32.mxu1 %vm4277_vm0, %v4278_v9  ;;  %v3084_v8 = vld [vmem:[%s5428_s4 + $0x6c5] ss:$0 sm:$0xff] }
0x17d3   :  { %4158 = vmatprep.subr.bf16.mxu1 %v4276_v3 }
0x17d6   :  { %4160 = vmatpush3.bf16.msra.mxu1 %v4159_v13 }
0x17d7   :  { %4161 = vmatprep.subr.bf16.mxu1 %v4276_v3 }
0x17da   :  { %4163 = vmatpush3.bf16.msra.mxu1 %v4162_v18  ;;  %v1622_v18 = vmul.f32 0.01, %v1620_v11 }
0x17db   :  { %4164 = vmatprep.subr.bf16.mxu1 %v4276_v3 }
0x17de   :  { %4166 = vmatpush3.bf16.msra.mxu1 %v4165_v21 }
0x17df   :  { %4179 = vmatprep.subr.bf16.mxu1 %v4276_v3 }
0x17e1   :  { %3830 = vmatmul.mubr.msk.f32.vlgmr.msra.gmra.mrb[28].mxu1 %vm319_vm3, %v2334_v10 }
0x17e2   :  { %3867 = vmatprep.mubr.msk.f32.mxu1 %vm4277_vm0, %v4278_v9  ;;  %4181 = vmatpush3.bf16.msra.mxu1 %v4180_v40  ;;  %v2806_v40 = vld [vmem:[%s5428_s4 + $0x688] sm:$0xff] }
0x17e3   :  { %4182 = vmatprep.subr.bf16.mxu1 %v4276_v3  ;;  %v4174_v41 = vpack.c.bf16 %v2806_v40, %v2805_v2 }
0x17e6   :  { %4184 = vmatpush3.bf16.msra.mxu1 %v4183_v46 }
0x17e7   :  { %4185 = vmatprep.subr.bf16.mxu1 %v4276_v3 }
0x17ea   :  { %4187 = vmatpush3.bf16.msra.mxu1 %v4186_v52  ;;  %v3085_v52 = vld [vmem:[%s5428_s4 + $0x6c6] ss:$0 sm:$0xff] }
0x17eb   :  { %4188 = vmatprep.subr.bf16.mxu1 %v4276_v3 }
0x17ee   :  { %4190 = vmatpush3.bf16.msra.mxu1 %v4189_v58 }
0x18a4   :  { %v2561_v22 = vpop.f32.mrb[26].mxu1 }
0x18a5   :  { %v2565_v25 = vadd.f32 %v2561_v22, %v5180_v39  ;;  %v3793_v24 = vpop.f32.mrb[27].mxu1  ;;  %v4144_v39 = vpack.c.bf16 %v2609_v37, %v2608_v36  ;;  %v2803_v37 = vld [vmem:[%s5428_s4 + $0x670] sm:$0xff] }
0x18a7   :  { %v2573_v26 = vadd.f32 %v3079_v23, %v2565_v25  ;;  %4145 = vmatpush3.bf16.msra.mxu0 %v4144_v39  ;;  %v1629_v23 = vlaneseq  ;;  %v4171_v39 = vpack.c.bf16 %v2804_v38, %v2803_v37 }
0x18a8   :  { %4146 = vmatprep.subr.bf16.mxu0 %v4276_v3 }
0x18a9   :  { %vm2574_vm15 = vcmp.ge.f32.partialorder %v2573_v26, 0.0  ;;  %v2575_v27 = vmul.f32 0.01, %v2573_v26  ;;  %v5337_v24 = vand.u32 127, %v1629_v23 }
0x18ab   :  { %v2576_v28 = vsel %vm2574_vm15, %v2573_v26, %v2575_v27  ;;  %4148 = vmatpush3.bf16.msra.mxu0 %v4147_v44  ;;  %vm1631_vm4 = vcmp.lt.s32.totalorder %v5337_v24, 16  ;;  %v4177_v44 = vpack.c.bf16 %v2808_v43, %v2807_v42 }
0x18ac   :  { %v2577_v17 = vsel %vm319_vm3, %v2576_v28, 0.0  ;;  %4149 = vmatprep.subr.bf16.mxu0 %v4276_v3 }
0x18ad   :  { %2578 = vadd.xlane.f32.xlu0 %v2577_v17 }
0x18af   :  { %4151 = vmatpush3.bf16.msra.mxu0 %v4150_v50 }
0x18b0   :  { %4152 = vmatprep.subr.bf16.mxu0 %v4276_v3 }
0x18b3   :  { %4154 = vmatpush3.bf16.msra.mxu0 %v4153_v56 }
0x18b4   :  { %v5257_v29 = vpop.f32.mrb[28].mxu1  ;;  %4167 = vmatprep.subr.bf16.mxu0 %v4276_v3 }
0x18b5   :  { %v3831_v30 = vpop.f32.mrb[29].mxu1 }
0x193a   :  { %v2579_v31 = vpop.xlane.xlu0 %2578 }
0x193b   :  { %v2580_v32 = vmul.f32 0.015625, %v2579_v31 }
0x193d   :  { %v2581_v33 = vsub.f32 %v2576_v28, %v2580_v32 }
0x193f   :  { %v2582_v34 = vmul.f32 %v2581_v33, %v2581_v33 }
0x1941   :  { %v2583_v35 = vsel %vm319_vm3, %v2582_v34, 0.0  ;;  %v2801_v34 = vld [vmem:[%s5428_s4 + $0x660] sm:$0xff] }
0x1942   :  { %2584 = vadd.xlane.f32.xlu1 %v2583_v35  ;;  %v2802_v35 = vld [vmem:[%s5428_s4 + $0x668] sm:$0xff] }
0x1943   :  { %v4168_v36 = vpack.c.bf16 %v2802_v35, %v2801_v34 }
0x19cf   :  { %v2585_v59 = vpop.xlane.xlu1 %2584 }
0x19d0   :  { %v2586_v60 = vmul.f32 0.015625, %v2585_v59  ;;  %v3056_v59 = vld [vmem:[%s5428_s4 + $0x6b5] ss:$0 sm:$0xff] }
0x19d2   :  { %v2587_v61 = vadd.f32 1e-05, %v2586_v60 }
0x19d4   :  { %4220 = vrsqrt.f32 %v2587_v61 }
0x19de   :  { %v4221_v62 = vpop.eup %4220 }
0x19df   :  { %v2589_v0 = vmul.f32 %v4221_v62, %v2581_v33 }
0x19e1   :  { %v2594_v4 = vmul.f32 %v3080_v63, %v2589_v0  ;;  %v3089_v63 = vld [vmem:[%s5428_s4 + $0x6c8] ss:$0 sm:$0xff] }
0x19e3   :  { %v2599_v5 = vadd.f32 %v3081_v1, %v2594_v4 }
0x19e5   :  { %3811 = vmatmul.mubr.msk.f32.vlgmr.msra.gmra.mrb[26].mxu0 %vm319_vm3, %v2599_v5  ;;  %3868 = vmatmul.mubr.msk.f32.vlgmr.msra.gmra.mrb[30].mxu1 %vm319_vm3, %v2599_v5 }
0x19e6   :  { %3848 = vmatprep.mubr.msk.f32.mxu0 %vm4277_vm0, %v4278_v9  ;;  %vm1621_vm0 = vcmp.ge.f32.partialorder %v1620_v11, 0.0  ;;  %4169 = vmatpush3.bf16.msra.mxu0 %v4168_v36 }
0x19e7   :  { %v1623_v21 = vsel %vm1621_vm0, %v1620_v11, %v1622_v18  ;;  %4170 = vmatprep.subr.bf16.mxu0 %v4276_v3 }
0x19e8   :  { %v1624_v22 = vsel %vm319_vm3, %v1623_v21, 0.0 }
0x19ea   :  { %4172 = vmatpush3.bf16.msra.mxu0 %v4171_v39 }
0x19eb   :  { %4173 = vmatprep.subr.bf16.mxu0 %v4276_v3 }
0x19ee   :  { %4175 = vmatpush3.bf16.msra.mxu0 %v4174_v41 }
0x19ef   :  { %4176 = vmatprep.subr.bf16.mxu0 %v4276_v3  ;;  %v3086_v3 = vld [vmem:[%s5428_s4 + $0x6c7] ss:$0 sm:$0xff] }
0x19f2   :  { %4178 = vmatpush3.bf16.msra.mxu0 %v4177_v44 }
0x1ab8   :  { %v2685_v7 = vpop.f32.mrb[26].mxu0  ;;  %v5331_v10 = vpop.f32.mrb[30].mxu1 }
0x1ab9   :  { %v2756_v12 = vadd.f32 %v5257_v29, %v2685_v7  ;;  %v3812_v13 = vpop.f32.mrb[27].mxu0  ;;  %v3869_v14 = vpop.f32.mrb[31].mxu1 }
0x1abb   :  { %v2766_v15 = vadd.f32 %v3084_v8, %v2756_v12 }
0x1abd   :  { %vm2767_vm2 = vcmp.ge.f32.partialorder %v2766_v15, 0.0  ;;  %v2768_v9 = vmul.f32 0.01, %v2766_v15 }
0x1abf   :  { %v2769_v19 = vsel %vm2767_vm2, %v2766_v15, %v2768_v9 }
0x1ac0   :  { %v2770_v20 = vsel %vm319_vm3, %v2769_v19, 0.0 }
0x1ac1   :  { %2771 = vadd.xlane.f32.xlu0 %v2770_v20 }
0x1ac5   :  { %1625 = vadd.xlane.f32.xlu0 %v1624_v22 }
0x1b4e   :  { %v2772_v25 = vpop.xlane.xlu0 %2771 }
0x1b4f   :  { %v2773_v16 = vmul.f32 0.015625, %v2772_v25 }
0x1b51   :  { %v2774_v26 = vsub.f32 %v2769_v19, %v2773_v16 }
0x1b52   :  { %v1626_v27 = vpop.xlane.xlu0 %1625 }
0x1b53   :  { %v1627_v28 = vmul.f32 0.0625, %v1626_v27  ;;  %v2775_v17 = vmul.f32 %v2774_v26, %v2774_v26 }
0x1b55   :  { %v1628_v29 = vsub.f32 %v1623_v21, %v1627_v28  ;;  %v2776_v30 = vsel %vm319_vm3, %v2775_v17, 0.0 }
0x1b56   :  { %2777 = vadd.xlane.f32.xlu1 %v2776_v30 }
0x1b57   :  { %v1632_v31 = vsel %vm1631_vm4, %v1628_v29, 0.0 }
0x1b58   :  { %v1633_v32 = vmul.f32 %v1632_v31, %v1632_v31 }
0x1b5a   :  { %v1634_v33 = vsel %vm319_vm3, %v1633_v32, 0.0 }
0x1b5b   :  { %1635 = vadd.xlane.f32.xlu0 %v1634_v33 }
0x1be3   :  { %v2778_v45 = vpop.xlane.xlu1 %2777 }
0x1be4   :  { %v2779_v46 = vmul.f32 0.015625, %v2778_v45 }
0x1be6   :  { %v2780_v47 = vadd.f32 1e-05, %v2779_v46 }
0x1be8   :  { %4222 = vrsqrt.f32 %v2780_v47  ;;  %v1636_v48 = vpop.xlane.xlu0 %1635 }
0x1be9   :  { %v1637_v49 = vmul.f32 0.0625, %v1636_v48 }
0x1beb   :  { %v1638_v50 = vadd.f32 1e-05, %v1637_v49 }
0x1bed   :  { %4224 = vrsqrt.f32 %v1638_v50 }
0x1bf2   :  { %v4223_v51 = vpop.eup %4222 }
0x1bf3   :  { %v2782_v53 = vmul.f32 %v4223_v51, %v2774_v26 }
0x1bf5   :  { %v2787_v54 = vmul.f32 %v3085_v52, %v2782_v53 }
0x1bf7   :  { %v4225_v55 = vpop.eup %4224  ;;  %v2792_v56 = vadd.f32 %v3086_v3, %v2787_v54 }
0x1bf8   :  { %v1640_v58 = vmul.f32 %v4225_v55, %v1628_v29 }
0x1bf9   :  { %3849 = vmatmul.mubr.msk.f32.vlgmr.msra.gmra.mrb[28].mxu0 %vm319_vm3, %v2792_v56 }
0x1bfa   :  { %v1645_v60 = vmul.f32 %v3055_v57, %v1640_v58 }
0x1bfc   :  { %v1650_v61 = vadd.f32 %v3056_v59, %v1645_v60 }
0x1bfe   :  { %1651 = vst.msk [vmem:[#allocation2] sm:$0xff] %vm33_vm1, %v1650_v61 }
0x1ccc   :  { %v2878_v62 = vpop.f32.mrb[28].mxu0 }
0x1ccd   :  { %v2949_v0 = vadd.f32 %v5331_v10, %v2878_v62  ;;  %v3850_v1 = vpop.f32.mrb[29].mxu0 }
0x1ccf   :  { %v2959_v4 = vadd.f32 %v3089_v63, %v2949_v0 }
0x1cd1   :  { %vm2960_vm5 = vcmp.ge.f32.partialorder %v2959_v4, 0.0  ;;  %v2961_v5 = vmul.f32 0.01, %v2959_v4 }
0x1cd3   :  { %v2962_v6 = vsel %vm2960_vm5, %v2959_v4, %v2961_v5 }
0x1cd4   :  { %v2963_v7 = vsel %vm319_vm3, %v2962_v6, 0.0 }
0x1cd5   :  { %2964 = vadd.xlane.f32.xlu1 %v2963_v7 }
0x1d62   :  { %v2965_v8 = vpop.xlane.xlu1 %2964 }
0x1d63   :  { %v2966_v11 = vmul.f32 0.0625, %v2965_v8 }
0x1d65   :  { %v2967_v12 = vsub.f32 %v2962_v6, %v2966_v11 }
0x1d67   :  { %v2968_v13 = vsel %vm1631_vm4, %v2967_v12, 0.0 }
0x1d68   :  { %v2969_v14 = vmul.f32 %v2968_v13, %v2968_v13 }
0x1d6a   :  { %v2970_v15 = vsel %vm319_vm3, %v2969_v14, 0.0 }
0x1d6b   :  { %2971 = vadd.xlane.f32.xlu1 %v2970_v15 }
0x1d6c   :  { %4239 = shalt.err (!%p4236_p4)
}
0x1d6d   :  { %s4240_s7 = scalar_lea.hbm %s5429_s5, 128 }
0x1d6e   :  { %p4241_p5 = scmp.ne.s32.totalorder %s5429_s5, %s4240_s7  ;;  %p4244_p6 = scmp.lt.u32.totalorder %s4240_s7, %s5429_s5 }
0x1d70   :  { %p4246_p7 = pnand %p4244_p6, %p4241_p5 }
0x1d72   :  { %4249 = shalt.err (!%p4246_p7)
}
0x1d73   :  { %2997 = dma.vmem_to_hbm [thread:$0]  %s2995_s2, 128, %s5429_s5, [#allocation3]   ;;  %v3090_v20 = vld [vmem:[%s5428_s4 + $0x6c9] ss:$0 sm:$0xff]  ;;  %v3091_v22 = vld [vmem:[%s5428_s4 + $0x6ca] ss:$0 sm:$0xff] }
0x1d74   :  { %s4280_s16 = smov [#allocation4]  }
0x1d75   :  { %s3004_s3 = sshll.u32 %s4280_s16, 4  ;;  %s3005_s3 = int_to_ptr.vmem [resolvable:$true] %s3004_s3 }
0x1d76   :  { %s4250_s5 = scalar_lea.vmem %s3005_s3, 128  ;;  %p4255_p9 = scmp.lt.s32.totalorder %s3005_s3, %s3005_s3 }
0x1d77   :  { %p4251_p8 = scmp.ne.s32.totalorder %s3005_s3, %s4250_s5  ;;  %p4256_p10 = scmp.lt.s32.totalorder %s4250_s5, %s4250_s5 }
0x1d79   :  { %p4257_p11 = por %p4256_p10, %p4255_p9 }
0x1d7b   :  { %p4258_p12 = pnand %p4257_p11, %p4251_p8 }
0x1df8   :  { %v2972_v10 = vpop.xlane.xlu1 %2971 }
0x1df9   :  { %v2973_v9 = vmul.f32 0.0625, %v2972_v10 }
0x1dfb   :  { %v2974_v18 = vadd.f32 1e-05, %v2973_v9 }
0x1dfd   :  { %4226 = vrsqrt.f32 %v2974_v18 }
0x1e07   :  { %v4227_v19 = vpop.eup %4226 }
0x1e08   :  { %v2976_v21 = vmul.f32 %v4227_v19, %v2967_v12 }
0x1e0a   :  { %v2981_v23 = vmul.f32 %v3090_v20, %v2976_v21 }
0x1e0c   :  { %v2986_v25 = vadd.f32 %v3091_v22, %v2981_v23 }
0x1e0e   :  { %2987 = vst.msk [vmem:[#allocation4] sm:$0xff] %vm33_vm1, %v2986_v25 }
0x1e0f   :  { %4261 = shalt.err (!%p4258_p12)
}
0x1e10   :  { %s4262_s19 = scalar_lea.hbm %s5430_s6, 128 }
0x1e11   :  { %p4263_p13 = scmp.ne.s32.totalorder %s5430_s6, %s4262_s19  ;;  %p4266_p0 = scmp.lt.u32.totalorder %s4262_s19, %s5430_s6 }
0x1e13   :  { %p4268_p1 = pnand %p4266_p0, %p4263_p13 }
0x1e15   :  { %4271 = shalt.err (!%p4268_p1)
}
0x1e16   :  { %3007 = dma.vmem_to_hbm [thread:$0]  %s3005_s3, 128, %s5430_s6, [#allocation5]  }
0x1e17   :  { %4272 = dma.done.wait [#allocation3], 128  }
0x1e18   :  { %4273 = vsyncadd [#allocation3], 4294967168 }
0x1e19   :  { %4274 = dma.done.wait [#allocation5], 128  }
0x1e1a   :  { %4275 = vsyncadd [#allocation5], 4294967168 }
0x1e1b   :  { %3014 = vsyncpa [#allocation3], 1 }
0x1e1c   :  { %3015 = vsyncpa [#allocation5], 1 }

</bundles_post_ra>
